<compile_context>
chip_gen: v6e
topology: v6e:2x2x1
jax: 0.10.0
libtpu: 0.0.40
codegen_flags: <defaults>
</compile_context>

<pallas_src>
import functools

import jax
import jax.numpy as jnp
from jax.experimental import pallas as pl
from jax.experimental.pallas import tpu as pltpu


_VMEM_LIMIT = 48 * 1024 * 1024


def _round_up(x, m):
    return ((x + m - 1) // m) * m


def _pick_row_tile(m, cap=512):
    """Largest row tile <= cap: full extent if small, else a multiple-of-8 divisor."""
    if m <= cap:
        return m
    for d in range(cap - cap % 8, 7, -8):
        if m % d == 0:
            return d
    return None  # caller pads


def _pick_k_tile(k, cap=512):
    if k <= cap:
        return k
    for d in (512, 384, 256, 128):
        if k % d == 0:
            return d
    return k if k <= 1024 else None  # caller pads if None


def _pick_n_tile(n):
    if n <= 256:
        return n
    if n % 256 == 0:
        return 256
    if n % 128 == 0:
        return 128
    return None


def _largest_divisor_leq(n, cap):
    for d in range(min(cap, n), 0, -1):
        if n % d == 0:
            return d
    return 1


# --------------------------------------------------------------------------
# Fused matmul + bias (+ residual) (+ activation) Pallas kernel
# --------------------------------------------------------------------------
def _make_mm_kernel(activation, has_residual):
    def kernel(*refs):
        if has_residual:
            x_ref, w_ref, b_ref, r_ref, o_ref, acc_ref = refs
        else:
            x_ref, w_ref, b_ref, o_ref, acc_ref = refs
            r_ref = None
        k = pl.program_id(2)

        @pl.when(k == 0)
        def _():
            acc_ref[...] = jnp.zeros_like(acc_ref)

        acc_ref[...] += jnp.dot(x_ref[...], w_ref[...],
                                preferred_element_type=jnp.float32)

        @pl.when(k == pl.num_programs(2) - 1)
        def _():
            y = acc_ref[...] + b_ref[...]
            if has_residual:
                y = y + r_ref[...].astype(jnp.float32)
            if activation == "relu":
                y = jnp.maximum(y, 0.0)
            elif activation == "sigmoid":
                y = jax.nn.sigmoid(y)
            o_ref[...] = y.astype(o_ref.dtype)

    return kernel


def _matmul_bias_act(lhs, rhs, bias, residual, activation):
    """act(lhs @ rhs + bias [+ residual]); bf16 MXU operands, f32 accumulation."""
    M, K = lhs.shape
    N = rhs.shape[1]

    tm = _pick_row_tile(M, 512)
    if tm is None:
        Mp = _round_up(M, 128)
        tm = 128
        lhs = jnp.pad(lhs, ((0, Mp - M), (0, 0)))
        if residual is not None:
            residual = jnp.pad(residual, ((0, Mp - M), (0, 0)))
    else:
        Mp = M

    tk = _pick_k_tile(K, 512)
    if tk is None:
        Kp = _round_up(K, 128)
        tk = 128
        lhs = jnp.pad(lhs, ((0, 0), (0, Kp - K)))
        rhs = jnp.pad(rhs, ((0, Kp - K), (0, 0)))
    else:
        Kp = K

    tn = _pick_n_tile(N)
    if tn is None:
        Np = _round_up(N, 128)
        tn = 128
        rhs = jnp.pad(rhs, ((0, 0), (0, Np - N)))
        bias = jnp.pad(bias, ((0, 0), (0, Np - N)))
        if residual is not None:
            residual = jnp.pad(residual, ((0, 0), (0, Np - N)))
    else:
        Np = N

    args = [lhs.astype(jnp.bfloat16), rhs.astype(jnp.bfloat16), bias]
    in_specs = [
        pl.BlockSpec((tm, tk), lambda j, i, k: (i, k)),
        pl.BlockSpec((tk, tn), lambda j, i, k: (k, j)),
        pl.BlockSpec((1, tn), lambda j, i, k: (0, j)),
    ]
    if residual is not None:
        args.append(residual.astype(jnp.bfloat16))
        in_specs.append(pl.BlockSpec((tm, tn), lambda j, i, k: (i, j)))

    out = pl.pallas_call(
        _make_mm_kernel(activation, residual is not None),
        out_shape=jax.ShapeDtypeStruct((Mp, Np), jnp.bfloat16),
        grid_spec=pltpu.PrefetchScalarGridSpec(
            num_scalar_prefetch=0,
            # Cout tiles lead the grid: at batch=2 late stages M collapses to a
            # single tile, the Cout axis keeps both v7x TensorCores busy.
            grid=(Np // tn, Mp // tm, Kp // tk),
            in_specs=in_specs,
            out_specs=pl.BlockSpec((tm, tn), lambda j, i, k: (i, j)),
            scratch_shapes=[pltpu.VMEM((tm, tn), jnp.float32)],
        ),
        compiler_params=pltpu.CompilerParams(
            dimension_semantics=("parallel", "parallel", "arbitrary"),
            vmem_limit_bytes=_VMEM_LIMIT),
    )(*args)
    if Mp != M or Np != N:
        out = out[:M, :N]
    return out


# --------------------------------------------------------------------------
# Generic conv via im2col (only the 7 stride-2 convs + all 1x1 convs use this)
# --------------------------------------------------------------------------
@functools.partial(jax.jit, static_argnames=("ksize", "stride", "padding", "activation"))
def conv2d_im2col(x, rhs, bias, residual, *, ksize, stride, padding, activation):
    # x: (N,H,W,Cin) bf16; rhs: (ksize*ksize*Cin, Cout) bf16; bias: (1,Cout) f32
    N, H, W, Cin = x.shape
    Cout = rhs.shape[1]
    OH = (H + 2 * padding - ksize) // stride + 1
    OW = (W + 2 * padding - ksize) // stride + 1
    if padding:
        x = jnp.pad(x, ((0, 0), (padding, padding), (padding, padding), (0, 0)))
    if ksize == 1 and stride == 1:
        lhs = x.reshape(N * OH * OW, Cin)          # 1x1 conv: pure reshape, no copy
    else:
        cols = [x[:, kh:kh + OH * stride:stride, kw:kw + OW * stride:stride, :]
                for kh in range(ksize) for kw in range(ksize)]
        patches = cols[0] if len(cols) == 1 else jnp.concatenate(cols, axis=-1)
        lhs = patches.reshape(N * OH * OW, ksize * ksize * Cin)
    res2d = None if residual is None else residual.reshape(N * OH * OW, Cout)
    out = _matmul_bias_act(lhs, rhs, bias, res2d, activation)
    return out.reshape(N, OH, OW, Cout)


# --------------------------------------------------------------------------
# Direct 3x3 / stride-1 conv + folded BN + ReLU (no im2col materialization)
# --------------------------------------------------------------------------
def _make_conv3x3_kernel(ow, toh):
    def kernel(x_ref, w_ref, b_ref, o_ref, acc_ref):
        k = pl.program_id(2)

        @pl.when(k == 0)
        def _():
            acc_ref[...] = jnp.zeros_like(acc_ref)

        w_taps = [w_ref[0], w_ref[1], w_ref[2]]
        for t in range(toh):
            part = acc_ref[t]
            for kw in range(3):
                # horizontal tap = static sublane-offset slice of the padded row
                part = part + jnp.dot(x_ref[t, kw:kw + ow, :], w_taps[kw],
                                      preferred_element_type=jnp.float32)
            acc_ref[t] = part

        @pl.when(k == pl.num_programs(2) - 1)
        def _():
            y = acc_ref[...] + b_ref[...]
            o_ref[...] = jnp.maximum(y, 0.0).astype(o_ref.dtype)

    return kernel


@jax.jit
def conv3x3_s1_relu(x, w2, bias):
    """3x3/stride-1/pad-1 conv + BN + ReLU.

    Vertical taps folded into the channel (K) axis of one (N*OH, W+2, 3*Cin)
    slab; horizontal taps folded into the Pallas K reduction via in-kernel
    slices.  Avoids the 9x im2col HBM blowup of the previous version.
    """
    N, H, W, Cin = x.shape
    Cout = w2.shape[2]
    OH, OW, Wp = H, W, W + 2
    xp = jnp.pad(x, ((0, 0), (1, 1), (1, 1), (0, 0)))
    xh = jnp.concatenate([xp[:, kh:kh + OH, :, :] for kh in range(3)], axis=-1)
    xh = xh.reshape(N * OH, Wp, 3 * Cin)

    R, K3 = N * OH, 3 * Cin
    toh = _largest_divisor_leq(R, 8)
    tk = _pick_k_tile(K3, 512)
    if tk is None or K3 % tk:
        tk = K3
    tn = _pick_n_tile(Cout)

    out = pl.pallas_call(
        _make_conv3x3_kernel(OW, toh),
        out_shape=jax.ShapeDtypeStruct((R, OW, Cout), jnp.bfloat16),
        grid_spec=pltpu.PrefetchScalarGridSpec(
            num_scalar_prefetch=0,
            grid=(R // toh, Cout // tn, K3 // tk),
            in_specs=[
                pl.BlockSpec((toh, Wp, tk), lambda i, j, k: (i, 0, k)),
                pl.BlockSpec((3, tk, tn), lambda i, j, k: (0, k, j)),
                pl.BlockSpec((1, tn), lambda i, j, k: (0, j)),
            ],
            out_specs=pl.BlockSpec((toh, OW, tn), lambda i, j, k: (i, 0, j)),
            scratch_shapes=[pltpu.VMEM((toh, OW, tn), jnp.float32)],
        ),
        compiler_params=pltpu.CompilerParams(
            dimension_semantics=("parallel", "parallel", "arbitrary"),
            vmem_limit_bytes=_VMEM_LIMIT),
    )(xh, w2, bias)
    return out.reshape(N, OH, OW, Cout)


# --------------------------------------------------------------------------
# MaxPool 3x3 / stride 2 / pad 1 — tiled (VMEM-safe), no channel padding
# --------------------------------------------------------------------------
def _maxpool_kernel(*refs):
    o_ref = refs[-1]
    m = refs[0][...]
    for r in refs[1:-1]:
        m = jnp.maximum(m, r[...])
    o_ref[...] = m


@jax.jit
def maxpool2d_3x3_s2_p1(x):
    # TODO(synk): the 9 tap slabs are still materialized by XLA; a fully
    # stack-free pool would need in-kernel strided sublane loads.
    N, H, W, C = x.shape
    OH = (H + 2 - 3) // 2 + 1
    OW = (W + 2 - 3) // 2 + 1
    # Input is post-ReLU (>= 0) so zero padding is equivalent to -inf padding.
    xp = jnp.pad(x, ((0, 0), (1, 1), (1, 1), (0, 0)))
    taps = [xp[:, kh:kh + OH * 2:2, kw:kw + OW * 2:2, :].reshape(N * OH * OW, C)
            for kh in range(3) for kw in range(3)]
    M = N * OH * OW
    tm = _pick_row_tile(M, 512)
    if tm is None:
        Mp = _round_up(M, 256)
        tm = 256
        taps = [jnp.pad(t, ((0, Mp - M), (0, 0))) for t in taps]
    else:
        Mp = M
    out = pl.pallas_call(
        _maxpool_kernel,
        out_shape=jax.ShapeDtypeStruct((Mp, C), x.dtype),
        grid_spec=pltpu.PrefetchScalarGridSpec(
            num_scalar_prefetch=0,
            grid=(Mp // tm,),
            in_specs=[pl.BlockSpec((tm, C), lambda i: (i, 0))] * 9,
            out_specs=pl.BlockSpec((tm, C), lambda i: (i, 0)),
        ),
        compiler_params=pltpu.CompilerParams(
            dimension_semantics=("parallel",),
            vmem_limit_bytes=_VMEM_LIMIT),
    )(*taps)
    return out[:M].reshape(N, OH, OW, C)


# --------------------------------------------------------------------------
# Head: global average pool + Linear + Sigmoid, fused in one Pallas kernel
# --------------------------------------------------------------------------
def _head_kernel(x_ref, w_ref, b_ref, o_ref):
    pooled = jnp.mean(x_ref[...].astype(jnp.float32), axis=1)        # (N, C)
    y = jnp.dot(pooled, w_ref[...], preferred_element_type=jnp.float32) + b_ref[...]
    o_ref[...] = jax.nn.sigmoid(y)


@functools.partial(jax.jit, static_argnames=("ncls",))
def head_avgpool_fc_sigmoid(x, w, b, *, ncls):
    # x: (N,H,W,2048) bf16; w: (2048, ncls_pad) f32; b: (1, ncls_pad) f32
    N, H, W, C = x.shape
    xr = x.reshape(N, H * W, C)
    out = pl.pallas_call(
        _head_kernel,
        out_shape=jax.ShapeDtypeStruct((N, w.shape[1]), jnp.float32),
    )(xr, w, b)
    return out[:, :ncls]


# --------------------------------------------------------------------------
# Deterministic parameter construction (BN folded, weights pre-packed once)
# --------------------------------------------------------------------------
def _conv_bn_fold(key_fn, cin, cout, k, extra_scale=1.0):
    fan_in = k * k * cin
    w = jax.random.normal(key_fn(), (k, k, cin, cout), jnp.float32)
    w = w * (extra_scale * 0.5 * (2.0 / fan_in) ** 0.5)
    gamma = 1.0 + 0.1 * jax.random.normal(key_fn(), (cout,), jnp.float32)
    beta = 0.05 * jax.random.normal(key_fn(), (cout,), jnp.float32)
    mean = 0.05 * jax.random.normal(key_fn(), (cout,), jnp.float32)
    var = 1.0 + 0.1 * jax.random.uniform(key_fn(), (cout,), jnp.float32)
    scale = gamma / jnp.sqrt(var + 1e-5)            # BN eval-mode fold
    return w * scale[None, None, None, :], beta - mean * scale


def _as_matmul_params(w, b):
    k, _, cin, cout = w.shape
    return {"rhs": w.reshape(k * k * cin, cout).astype(jnp.bfloat16),
            "b": b.reshape(1, cout).astype(jnp.float32)}


def _as_conv3x3_params(w, b):
    _, _, cin, cout = w.shape
    # per-kw weight matrix, kh folded into the K axis (matches the xh slab)
    w2 = jnp.transpose(w, (1, 0, 2, 3)).reshape(3, 3 * cin, cout)
    return {"w2": w2.astype(jnp.bfloat16),
            "b": b.reshape(1, cout).astype(jnp.float32)}


def init_resnet152_params(key, class_count):
    counter = [0]

    def nk():
        counter[0] += 1
        return jax.random.fold_in(key, counter[0])

    params = {"stem": _as_matmul_params(*_conv_bn_fold(nk, 3, 64, 7))}
    # resnet152 bottleneck config: [3, 8, 36, 3]
    layers_cfg = [(64, 3, 1), (128, 8, 2), (256, 36, 2), (512, 3, 2)]
    expansion = 4
    inplanes = 64
    layers = []
    for planes, nblocks, stride in layers_cfg:
        blocks = []
        for bi in range(nblocks):
            s = stride if bi == 0 else 1
            blk = {"stride": s,
                   "conv1": _as_matmul_params(*_conv_bn_fold(nk, inplanes, planes, 1))}
            w3, b3 = _conv_bn_fold(nk, planes, planes, 3)
            blk["conv2"] = (_as_conv3x3_params(w3, b3) if s == 1
                            else _as_matmul_params(w3, b3))
            blk["conv3"] = _as_matmul_params(
                *_conv_bn_fold(nk, planes, planes * expansion, 1, extra_scale=0.2))
            if s != 1 or inplanes != planes * expansion:
                blk["downsample"] = _as_matmul_params(
                    *_conv_bn_fold(nk, inplanes, planes * expansion, 1))
            blocks.append(blk)
            inplanes = planes * expansion
        layers.append(blocks)
    params["layers"] = layers

    kernel_count = 512 * expansion                  # resnet152.fc.in_features == 2048
    ncls_pad = _round_up(class_count, 128)
    fc_w = jax.random.normal(nk(), (kernel_count, class_count), jnp.float32)
    fc_w = fc_w * (1.0 / kernel_count ** 0.5)
    fc_b = 0.01 * jax.random.normal(nk(), (class_count,), jnp.float32)
    params["fc"] = {
        "w": jnp.pad(fc_w, ((0, 0), (0, ncls_pad - class_count))),
        "b": jnp.pad(fc_b, (0, ncls_pad - class_count)).reshape(1, ncls_pad),
        "ncls": class_count,
    }
    return params


# --------------------------------------------------------------------------
# Full forward pass (stem -> maxpool -> 4 bottleneck stages -> head)
# --------------------------------------------------------------------------
def resnet152_forward(x_nchw, params):
    # NCHW -> NHWC once; all activations kept in bf16 between Pallas kernels.
    x = jnp.transpose(x_nchw, (0, 2, 3, 1)).astype(jnp.bfloat16)
    x = conv2d_im2col(x, params["stem"]["rhs"], params["stem"]["b"], None,
                      ksize=7, stride=2, padding=3, activation="relu")
    x = maxpool2d_3x3_s2_p1(x)
    for blocks in params["layers"]:
        for blk in blocks:
            s = blk["stride"]
            identity = x
            out = conv2d_im2col(x, blk["conv1"]["rhs"], blk["conv1"]["b"], None,
                                ksize=1, stride=1, padding=0, activation="relu")
            if s == 1:
                out = conv3x3_s1_relu(out, blk["conv2"]["w2"], blk["conv2"]["b"])
            else:
                out = conv2d_im2col(out, blk["conv2"]["rhs"], blk["conv2"]["b"], None,
                                    ksize=3, stride=s, padding=1, activation="relu")
            if "downsample" in blk:
                identity = conv2d_im2col(x, blk["downsample"]["rhs"],
                                         blk["downsample"]["b"], None,
                                         ksize=1, stride=s, padding=0,
                                         activation="none")
            # conv3 (1x1) + BN + residual add + ReLU fused in one Pallas matmul
            x = conv2d_im2col(out, blk["conv3"]["rhs"], blk["conv3"]["b"], identity,
                              ksize=1, stride=1, padding=0, activation="relu")
    return head_avgpool_fc_sigmoid(x, params["fc"]["w"], params["fc"]["b"],
                                   ncls=params["fc"]["ncls"])


if __name__ == "__main__":
    CLASS_COUNT = 14
    key = jax.random.PRNGKey(0)
    params = init_resnet152_params(jax.random.fold_in(key, 1), CLASS_COUNT)
    x = jax.random.normal(jax.random.fold_in(key, 2), (2, 3, 64, 64), jnp.float32)

    out = resnet152_forward(x, params)
    out = jax.block_until_ready(out)

    assert out.shape == (2, CLASS_COUNT), out.shape
    assert bool(jnp.all(jnp.isfinite(out)))
    assert bool(jnp.all((out >= 0.0) & (out <= 1.0)))  # Sigmoid output range
    print("KERNEL_OK")
</pallas_src>

<mosaic_0001>
module attributes {stable_mosaic.version = 11 : i64} {
  func.func @kernel(%arg0: i32, %arg1: i32, %arg2: i32, %arg3: memref<512x147xbf16, #tpu.memory_space<vmem>>, %arg4: memref<147x64xbf16, #tpu.memory_space<vmem>>, %arg5: memref<1x64xf32, #tpu.memory_space<vmem>>, %arg6: memref<512x64xbf16, #tpu.memory_space<vmem>>, %arg7: memref<512x64xf32, #tpu.memory_space<vmem>>) attributes {dimension_semantics = [#tpu.dimension_semantics<parallel>, #tpu.dimension_semantics<parallel>, #tpu.dimension_semantics<arbitrary>], iteration_bounds = array<i64: 1, 4, 1>, scalar_prefetch = 0 : i64, scratch_operands = 1 : i64, tpu.core_type = #tpu.core_type<tc>, window_params = [{transform_indices = @transform_0, window_bounds = array<i64: 512, 147>}, {transform_indices = @transform_1, window_bounds = array<i64: 147, 64>}, {transform_indices = @transform_2, window_bounds = array<i64: 1, 64>}, {transform_indices = @transform_3, window_bounds = array<i64: 512, 64>}]} {
    %c0_i32 = arith.constant 0 : i32
    %0 = arith.cmpi eq, %arg2, %c0_i32 : i32
    %1 = arith.extui %0 : i1 to i32
    %c0_i32_0 = arith.constant 0 : i32
    %2 = arith.cmpi ne, %1, %c0_i32_0 : i32
    scf.if %2 {
      %cst_10 = arith.constant 0.000000e+00 : f32
      %12 = vector.broadcast %cst_10 : f32 to vector<512x64xf32>
      %c0_11 = arith.constant 0 : index
      %c0_12 = arith.constant 0 : index
      %13 = vector.load %arg7[%c0_11, %c0_12] : memref<512x64xf32, #tpu.memory_space<vmem>>, vector<512x64xf32>
      tpu.vector_store %arg7[%c0_11, %c0_12], %12 {strides = array<i32>} : memref<512x64xf32, #tpu.memory_space<vmem>>, vector<512x64xf32>,
    } else {
    }
    %c0 = arith.constant 0 : index
    %c0_1 = arith.constant 0 : index
    %3 = vector.load %arg7[%c0, %c0_1] : memref<512x64xf32, #tpu.memory_space<vmem>>, vector<512x64xf32>
    %c0_2 = arith.constant 0 : index
    %c0_3 = arith.constant 0 : index
    %4 = vector.load %arg3[%c0_2, %c0_3] : memref<512x147xbf16, #tpu.memory_space<vmem>>, vector<512x147xbf16>
    %c0_4 = arith.constant 0 : index
    %c0_5 = arith.constant 0 : index
    %5 = vector.load %arg4[%c0_4, %c0_5] : memref<147x64xbf16, #tpu.memory_space<vmem>>, vector<147x64xbf16>
    %cst = arith.constant dense<0.000000e+00> : vector<512x64xf32>
    %6 = tpu.matmul %4, %5, %cst {dimension_numbers = #tpu.dot_dimension_numbers<[1], [0], [0], [1], [0, 0, 1, 1], [], []>} : vector<512x147xbf16>, vector<147x64xbf16>, vector<512x64xf32> -> vector<512x64xf32>
    %7 = arith.addf %3, %6 : vector<512x64xf32>
    %c0_6 = arith.constant 0 : index
    %c0_7 = arith.constant 0 : index
    %8 = vector.load %arg7[%c0_6, %c0_7] : memref<512x64xf32, #tpu.memory_space<vmem>>, vector<512x64xf32>
    tpu.vector_store %arg7[%c0_6, %c0_7], %7 {strides = array<i32>} : memref<512x64xf32, #tpu.memory_space<vmem>>, vector<512x64xf32>,
    %c0_i32_8 = arith.constant 0 : i32
    %9 = arith.cmpi eq, %arg2, %c0_i32_8 : i32
    %10 = arith.extui %9 : i1 to i32
    %c0_i32_9 = arith.constant 0 : i32
    %11 = arith.cmpi ne, %10, %c0_i32_9 : i32
    scf.if %11 {
      %c0_10 = arith.constant 0 : index
      %c0_11 = arith.constant 0 : index
      %12 = vector.load %arg7[%c0_10, %c0_11] : memref<512x64xf32, #tpu.memory_space<vmem>>, vector<512x64xf32>
      %c0_12 = arith.constant 0 : index
      %c0_13 = arith.constant 0 : index
      %13 = vector.load %arg5[%c0_12, %c0_13] : memref<1x64xf32, #tpu.memory_space<vmem>>, vector<1x64xf32>
      %14 = vector.broadcast %13 : vector<1x64xf32> to vector<512x64xf32>
      %15 = arith.addf %12, %14 : vector<512x64xf32>
      %cst_14 = arith.constant 0.000000e+00 : f32
      %16 = vector.broadcast %cst_14 : f32 to vector<512x64xf32>
      %17 = arith.maximumf %15, %16 : vector<512x64xf32>
      %18 = arith.truncf %17 : vector<512x64xf32> to vector<512x64xbf16>
      %c0_15 = arith.constant 0 : index
      %c0_16 = arith.constant 0 : index
      %19 = vector.load %arg6[%c0_15, %c0_16] : memref<512x64xbf16, #tpu.memory_space<vmem>>, vector<512x64xbf16>
      tpu.vector_store %arg6[%c0_15, %c0_16], %18 {strides = array<i32>} : memref<512x64xbf16, #tpu.memory_space<vmem>>, vector<512x64xbf16>,
    } else {
    }
    return
  }
  func.func @transform_0(%arg0: i32, %arg1: i32, %arg2: i32) -> (i32, i32) {
    %c0_i32 = arith.constant 0 : i32
    return %arg1, %arg2 : i32, i32
  }
  func.func @transform_1(%arg0: i32, %arg1: i32, %arg2: i32) -> (i32, i32) {
    %c0_i32 = arith.constant 0 : i32
    return %arg2, %arg0 : i32, i32
  }
  func.func @transform_2(%arg0: i32, %arg1: i32, %arg2: i32) -> (i32, i32) {
    %c0_i32 = arith.constant 0 : i32
    %c0_i32_0 = arith.constant 0 : i32
    return %c0_i32, %arg0 : i32, i32
  }
  func.func @transform_3(%arg0: i32, %arg1: i32, %arg2: i32) -> (i32, i32) {
    %c0_i32 = arith.constant 0 : i32
    return %arg1, %arg0 : i32, i32
  }
}

</mosaic_0001>

<bundles_post_ra>
// kernel: conv2d_im2col.1
= control target key start
LH: loop header
LB: loop body
LE: loop exit
PB: predicated region body
PF: predicated region fallthrough
CT: control target
= control target key end

     0   :  { %8 = vsyncpa [#allocation4], 0  ;;  %s3208_s0 = inlined_call_operand.vmem [shape: bf16[2048,147], index: 0, kind: input, shape index: {}]   ;;  %s3209_s1 = inlined_call_operand.vmem [shape: bf16[147,64], index: 1, kind: input, shape index: {}]   ;;  %s3210_s2 = inlined_call_operand.vmem [shape: f32[1,64], index: 2, kind: input, shape index: {}]   ;;  %s3211_s3 = inlined_call_operand.hbm [shape: bf16[2048,64], index: 3, kind: output, shape index: {}]  }
   0x1   :  { %10 = vsyncpa [#allocation4 + $0x1], 0  ;;  %s2536_s12 = smov 0   ;;  %s2538_s13 = smov 0  }
   0x2   :  { %s2540_s14 = smov 0   ;;  %s2542_s15 = smov 0  }
   0x3   :  { %s2544_s16 = smov 0   ;;  %s2546_s17 = smov 0  }
   0x4 LB: > { %s1992_s18 = sadd.s32 4294967295, %s2508_s17   ;;  %s1993_s19 = sadd.s32 4294967294, %s2508_s17   ;;  %s2508_s17 = sphi %s2546_s17, %s16_s17   ;;  %s2504_s16 = sphi %s2544_s16, %s3218_s16   ;;  %s2500_s15 = sphi %s2542_s15, %s3217_s15   ;;  %s2496_s14 = sphi %s2540_s14, %s3216_s14   ;;  %s2492_s13 = sphi %s2538_s13, %s3215_s13   ;;  %s2488_s12 = sphi %s2536_s12, %s3214_s12  }
   0x5   : > { %s31_s20 = sadd.s32 1, %s2504_s16  ;;  %s126_s21 = sadd.s32 1, %s2496_s14 }
   0x6   : > { %p33_p0 = scmp.ge.s32.totalorder %s31_s20, 4  ;;  %p136_p1 = scmp.ne.s32.totalorder %s2496_s14, %s2492_s13 }
   0x7   : > { %p137_p2 = scmp.eq.s32.totalorder %s1992_s18, 3  ;;  %p142_p3 = scmp.ne.s32.totalorder %s2492_s13, %s2488_s12 }
   0x8   : > { %s3220_s20 = smov (%p33_p0, %s31_s20), 0  ;;  %p143_p5 = scmp.eq.s32.totalorder %s1993_s19, 3 }
   0x9   : > { %p2576_p4 = por %p137_p2, %p136_p1  ;;  %s121_s23 = ssub.s32 %s2504_s16, %s3220_s20 }
   0xa   : > { %p1998_p6 = scmp.ge.s32.totalorder %s2508_s17, 1  ;;  %p124_p7 = scmp.eq.s32.totalorder %s121_s23, 0 }
   0xb   : > { %p2583_p8 = por %p143_p5, %p142_p3  ;;  %p194_p9 = scmp.lt.s32.totalorder %s2508_s17, 5 }
   0xc   : > { %s2589_s25 = scalar_select %p124_p7, %s2496_s14, %s126_s21  }
   0xd   : > { %p195_p10 = pnand %p1998_p6, %p194_p9 }
   0xe   : > { %s2000_s5 = sshll.u32 (!%p195_p10), %s2500_s15, 6  ;;  %s231_s7 = sand.u32 (!%p195_p10), 1, %s2492_s13  }
   0xf   : > { %198 = sbr.rel (%p195_p10) target bundleno = 409 (0x199), region = 32  ;;  %p236_p11 = scmp.lt.s32.totalorder (!%p195_p10), %s2000_s5, 255 }
  0x10   : > { %s1999_s10 = sshll.u32 (!%p195_p10), %s231_s7, 8  ;;  %s2244_s21 = sshll.u32 (!%p195_p10), %s2500_s15, 12 }
  0x11   : > { %s3153_s28 = scalar_lea.hbm (!%p195_p10), %s3211_s3, %s2244_s21  ;;  %s3163_s15 = scalar_lea.sflag (!%p195_p10), [#allocation4], %s231_s7 }
  0x12   : > { %s2513_s30 = smov (!%p195_p10), [#allocation3]  }
  0x13   : > { %s2436_s4 = sshll.u32 (!%p195_p10), %s2513_s30, 4  ;;  %s2437_s4 = int_to_ptr.vmem [resolvable:$false] %s2436_s4 }
  0x14   : > { %v2325_v0 = vld [vmem:[%s3209_s1 + $0x38] sm:$0xff]   ;;  %v2510_v1 = vmov 0   ;;  %v2326_v2 = vld [vmem:[%s3209_s1 + $0x30] sm:$0xff]   ;;  %v2327_v3 = vld [vmem:[%s3209_s1 + $0x28] sm:$0xff]   ;;  %s3222_s5 = smov (!%p236_p11, %s2000_s5), 255  ;;  %vm821_vm0 = vcmask 154624  }
  0x15   : > { %925 = vmatprep.subr.bf16.mxu0 %v2510_v1  ;;  %2245 = vmatprep.subr.bf16.mxu1 %v2510_v1  ;;  %v2328_v4 = vld [vmem:[%s3209_s1 + $0x20] sm:$0xff]   ;;  %s2179_s8 = sshll.u32 %s3222_s5, 3  ;;  %v2329_v5 = vld [vmem:[%s3209_s1 + $0x18] sm:$0xff]   ;;  %v2330_v8 = vld [vmem:[%s3209_s1 + $0x10] sm:$0xff]   ;;  %vm918_vm1 = vcmask 1040384   ;;  %vm919_vm2 = vcmask 1041408  }
  0x16   : > { %926 = vmatpush1.bf16.msra.mxu0 %v2325_v0  ;;  %2255 = vmatpush1.bf16.msra.mxu1 %v2325_v0  ;;  %s2615_s11 = scalar_lea.vmem %s3208_s0, %s2179_s8  ;;  %v2331_v9 = vld [vmem:[%s3209_s1 + $0x8] sm:$0xff]   ;;  %v2511_v10 = vmov 65535   ;;  %v2332_v12 = vld [vmem:[%s3209_s1] sm:$0xff]   ;;  %vm264_vm3 = vcmask 523264   ;;  %v2512_v19 = vmov 0.0   ;;  %vm1801_vm4 = vcmask 519168  }
  0x17   : > { %927 = vmatprep.subr.bf16.mxu0 %v2510_v1  ;;  %2246 = vmatprep.subr.bf16.mxu1 %v2510_v1  ;;  %v2337_v6 = vld [vmem:[%s2615_s11 + $0x4] ss:$8 sps:$4 sm:$0xff]   ;;  %v920_v11 = vsel %vm918_vm1, 4294967295, %v2511_v10  ;;  %v2333_v13 = vld [vmem:[%s3209_s1 + $0x48] ss:$0 sps:$4 sm:$0x33]  }
  0x18   : > { %v2340_v7 = vld [vmem:[%s2615_s11 + $0x104] ss:$8 sps:$4 sm:$0xff]   ;;  %2077 = vmatprep.mubr.msk.bf16.mxu0 %vm821_vm0, %v2337_v6  ;;  %v921_v14 = vsel %vm919_vm2, %v920_v11, 0  ;;  %v2654_v17 = vld [vmem:[%s2615_s11] ss:$8 sps:$4 sm:$0xff]   ;;  %265 = vst.msk [vmem:[#allocation2] sm:$0xff] %vm264_vm3, %v2512_v19 }
  0x19   : > { %2093 = vmatprep.mubr.msk.bf16.mxu1 %vm821_vm0, %v2340_v7  ;;  %v923_v15 = vand.u32 %v2333_v13, %v921_v14  ;;  %v2649_v16 = vld [vmem:[%s3209_s1 + $0x40] sm:$0xff]   ;;  %266 = vst.msk [vmem:[#allocation2 + $0x8] sm:$0xff] %vm264_vm3, %v2512_v19  ;;  %267 = vst.msk [vmem:[#allocation2 + $0x10] sm:$0xff] %vm264_vm3, %v2512_v19  ;;  %v2341_v20 = vld [vmem:[%s2615_s11 + $0x14] ss:$8 sps:$4 sm:$0xff]   ;;  %s2438_s5 = scalar_lea.vmem %s2437_s4, 8192 }
  0x1a   : > { %928 = vmatpush1.bf16.msra.mxu0 %v2326_v2  ;;  %2256 = vmatpush1.bf16.msra.mxu1 %v2326_v2  ;;  %v2657_v18 = vld [vmem:[%s2615_s11 + $0x100] ss:$8 sps:$4 sm:$0xff]   ;;  %268 = vst.msk [vmem:[#allocation2 + $0x18] sm:$0xff] %vm264_vm3, %v2512_v19  ;;  %269 = vst.msk [vmem:[#allocation2 + $0x20] sm:$0xff] %vm264_vm3, %v2512_v19  ;;  %v2343_v21 = vld [vmem:[%s2615_s11 + $0x114] ss:$8 sps:$4 sm:$0xff]  }
  0x1b   : > { %929 = vmatprep.subr.bf16.mxu0 %v2510_v1  ;;  %2247 = vmatprep.subr.bf16.mxu1 %v2510_v1  ;;  %270 = vst.msk [vmem:[#allocation2 + $0x28] sm:$0xff] %vm264_vm3, %v2512_v19  ;;  %271 = vst.msk [vmem:[#allocation2 + $0x30] sm:$0xff] %vm264_vm3, %v2512_v19  ;;  %v2345_v22 = vld [vmem:[%s2615_s11 + $0x10] ss:$8 sps:$4 sm:$0xff]   ;;  %v2347_v24 = vld [vmem:[%s2615_s11 + $0x24] ss:$8 sps:$4 sm:$0xff]  }
  0x1c   : > { %272 = vst.msk [vmem:[#allocation2 + $0x38] sm:$0xff] %vm264_vm3, %v2512_v19  ;;  %273 = vst.msk [vmem:[#allocation2 + $0x40] sm:$0xff] %vm264_vm3, %v2512_v19  ;;  %v2346_v23 = vld [vmem:[%s2615_s11 + $0x110] ss:$8 sps:$4 sm:$0xff]   ;;  %v2349_v25 = vld [vmem:[%s2615_s11 + $0x124] ss:$8 sps:$4 sm:$0xff]  }
  0x1d   : > { %274 = vst.msk [vmem:[#allocation2 + $0x48] sm:$0xff] %vm264_vm3, %v2512_v19  ;;  %275 = vst.msk [vmem:[#allocation2 + $0x50] sm:$0xff] %vm264_vm3, %v2512_v19  ;;  %v2351_v26 = vld [vmem:[%s2615_s11 + $0x20] ss:$8 sps:$4 sm:$0xff]   ;;  %v2353_v28 = vld [vmem:[%s2615_s11 + $0x34] ss:$8 sps:$4 sm:$0xff]  }
  0x1e   : > { %930 = vmatpush1.bf16.msra.mxu0 %v2327_v3  ;;  %2257 = vmatpush1.bf16.msra.mxu1 %v2327_v3  ;;  %276 = vst.msk [vmem:[#allocation2 + $0x58] sm:$0xff] %vm264_vm3, %v2512_v19  ;;  %277 = vst.msk [vmem:[#allocation2 + $0x60] sm:$0xff] %vm264_vm3, %v2512_v19  ;;  %v2352_v27 = vld [vmem:[%s2615_s11 + $0x120] ss:$8 sps:$4 sm:$0xff]   ;;  %v2355_v29 = vld [vmem:[%s2615_s11 + $0x134] ss:$8 sps:$4 sm:$0xff]  }
  0x1f   : > { %931 = vmatprep.subr.bf16.mxu0 %v2510_v1  ;;  %2248 = vmatprep.subr.bf16.mxu1 %v2510_v1  ;;  %278 = vst.msk [vmem:[#allocation2 + $0x68] sm:$0xff] %vm264_vm3, %v2512_v19  ;;  %279 = vst.msk [vmem:[#allocation2 + $0x70] sm:$0xff] %vm264_vm3, %v2512_v19  ;;  %v2357_v30 = vld [vmem:[%s2615_s11 + $0x30] ss:$8 sps:$4 sm:$0xff]   ;;  %v2359_v32 = vld [vmem:[%s2615_s11 + $0x44] ss:$8 sps:$4 sm:$0xff]  }
  0x20   : > { %280 = vst.msk [vmem:[#allocation2 + $0x78] sm:$0xff] %vm264_vm3, %v2512_v19  ;;  %281 = vst.msk [vmem:[#allocation2 + $0x80] sm:$0xff] %vm264_vm3, %v2512_v19  ;;  %v2358_v31 = vld [vmem:[%s2615_s11 + $0x130] ss:$8 sps:$4 sm:$0xff]   ;;  %v2361_v33 = vld [vmem:[%s2615_s11 + $0x144] ss:$8 sps:$4 sm:$0xff]  }
  0x21   : > { %282 = vst.msk [vmem:[#allocation2 + $0x88] sm:$0xff] %vm264_vm3, %v2512_v19  ;;  %283 = vst.msk [vmem:[#allocation2 + $0x90] sm:$0xff] %vm264_vm3, %v2512_v19  ;;  %v2363_v34 = vld [vmem:[%s2615_s11 + $0x40] ss:$8 sps:$4 sm:$0xff]   ;;  %v2365_v36 = vld [vmem:[%s2615_s11 + $0x54] ss:$8 sps:$4 sm:$0xff]  }
  0x22   : > { %932 = vmatpush1.bf16.msra.mxu0 %v2328_v4  ;;  %2258 = vmatpush1.bf16.msra.mxu1 %v2328_v4  ;;  %284 = vst.msk [vmem:[#allocation2 + $0x98] sm:$0xff] %vm264_vm3, %v2512_v19  ;;  %285 = vst.msk [vmem:[#allocation2 + $0xa0] sm:$0xff] %vm264_vm3, %v2512_v19  ;;  %v2364_v35 = vld [vmem:[%s2615_s11 + $0x140] ss:$8 sps:$4 sm:$0xff]   ;;  %v2367_v37 = vld [vmem:[%s2615_s11 + $0x154] ss:$8 sps:$4 sm:$0xff]  }
  0x23   : > { %933 = vmatprep.subr.bf16.mxu0 %v2510_v1  ;;  %2249 = vmatprep.subr.bf16.mxu1 %v2510_v1  ;;  %286 = vst.msk [vmem:[#allocation2 + $0xa8] sm:$0xff] %vm264_vm3, %v2512_v19  ;;  %287 = vst.msk [vmem:[#allocation2 + $0xb0] sm:$0xff] %vm264_vm3, %v2512_v19  ;;  %v2369_v38 = vld [vmem:[%s2615_s11 + $0x50] ss:$8 sps:$4 sm:$0xff]   ;;  %v2371_v40 = vld [vmem:[%s2615_s11 + $0x64] ss:$8 sps:$4 sm:$0xff]  }
  0x24   : > { %288 = vst.msk [vmem:[#allocation2 + $0xb8] sm:$0xff] %vm264_vm3, %v2512_v19  ;;  %289 = vst.msk [vmem:[#allocation2 + $0xc0] sm:$0xff] %vm264_vm3, %v2512_v19  ;;  %v2370_v39 = vld [vmem:[%s2615_s11 + $0x150] ss:$8 sps:$4 sm:$0xff]   ;;  %v2373_v41 = vld [vmem:[%s2615_s11 + $0x164] ss:$8 sps:$4 sm:$0xff]  }
  0x25   : > { %290 = vst.msk [vmem:[#allocation2 + $0xc8] sm:$0xff] %vm264_vm3, %v2512_v19  ;;  %291 = vst.msk [vmem:[#allocation2 + $0xd0] sm:$0xff] %vm264_vm3, %v2512_v19  ;;  %v2375_v42 = vld [vmem:[%s2615_s11 + $0x60] ss:$8 sps:$4 sm:$0xff]   ;;  %v2377_v44 = vld [vmem:[%s2615_s11 + $0x74] ss:$8 sps:$4 sm:$0xff]  }
  0x26   : > { %934 = vmatpush1.bf16.msra.mxu0 %v2329_v5  ;;  %2259 = vmatpush1.bf16.msra.mxu1 %v2329_v5  ;;  %292 = vst.msk [vmem:[#allocation2 + $0xd8] sm:$0xff] %vm264_vm3, %v2512_v19  ;;  %293 = vst.msk [vmem:[#allocation2 + $0xe0] sm:$0xff] %vm264_vm3, %v2512_v19  ;;  %v2376_v43 = vld [vmem:[%s2615_s11 + $0x160] ss:$8 sps:$4 sm:$0xff]   ;;  %v2379_v45 = vld [vmem:[%s2615_s11 + $0x174] ss:$8 sps:$4 sm:$0xff]  }
  0x27   : > { %935 = vmatprep.subr.bf16.mxu0 %v2510_v1  ;;  %2250 = vmatprep.subr.bf16.mxu1 %v2510_v1  ;;  %294 = vst.msk [vmem:[#allocation2 + $0xe8] sm:$0xff] %vm264_vm3, %v2512_v19  ;;  %295 = vst.msk [vmem:[#allocation2 + $0xf0] sm:$0xff] %vm264_vm3, %v2512_v19  ;;  %v2381_v46 = vld [vmem:[%s2615_s11 + $0x70] ss:$8 sps:$4 sm:$0xff]   ;;  %v2383_v48 = vld [vmem:[%s2615_s11 + $0x84] ss:$8 sps:$4 sm:$0xff]  }
  0x28   : > { %296 = vst.msk [vmem:[#allocation2 + $0xf8] sm:$0xff] %vm264_vm3, %v2512_v19  ;;  %297 = vst.msk [vmem:[#allocation2 + $0x100] sm:$0xff] %vm264_vm3, %v2512_v19  ;;  %v2382_v47 = vld [vmem:[%s2615_s11 + $0x170] ss:$8 sps:$4 sm:$0xff]   ;;  %v2385_v49 = vld [vmem:[%s2615_s11 + $0x184] ss:$8 sps:$4 sm:$0xff]  }
  0x29   : > { %298 = vst.msk [vmem:[#allocation2 + $0x108] sm:$0xff] %vm264_vm3, %v2512_v19  ;;  %299 = vst.msk [vmem:[#allocation2 + $0x110] sm:$0xff] %vm264_vm3, %v2512_v19  ;;  %v2387_v50 = vld [vmem:[%s2615_s11 + $0x80] ss:$8 sps:$4 sm:$0xff]   ;;  %v2389_v52 = vld [vmem:[%s2615_s11 + $0x94] ss:$8 sps:$4 sm:$0xff]  }
  0x2a   : > { %936 = vmatpush1.bf16.msra.mxu0 %v2330_v8  ;;  %2260 = vmatpush1.bf16.msra.mxu1 %v2330_v8  ;;  %300 = vst.msk [vmem:[#allocation2 + $0x118] sm:$0xff] %vm264_vm3, %v2512_v19  ;;  %301 = vst.msk [vmem:[#allocation2 + $0x120] sm:$0xff] %vm264_vm3, %v2512_v19  ;;  %v2388_v51 = vld [vmem:[%s2615_s11 + $0x180] ss:$8 sps:$4 sm:$0xff]   ;;  %v2391_v53 = vld [vmem:[%s2615_s11 + $0x194] ss:$8 sps:$4 sm:$0xff]  }
  0x2b   : > { %937 = vmatprep.subr.bf16.mxu0 %v2510_v1  ;;  %2251 = vmatprep.subr.bf16.mxu1 %v2510_v1  ;;  %302 = vst.msk [vmem:[#allocation2 + $0x128] sm:$0xff] %vm264_vm3, %v2512_v19  ;;  %303 = vst.msk [vmem:[#allocation2 + $0x130] sm:$0xff] %vm264_vm3, %v2512_v19  ;;  %v2393_v54 = vld [vmem:[%s2615_s11 + $0x90] ss:$8 sps:$4 sm:$0xff]   ;;  %v2395_v56 = vld [vmem:[%s2615_s11 + $0xa4] ss:$8 sps:$4 sm:$0xff]  }
  0x2c   : > { %304 = vst.msk [vmem:[#allocation2 + $0x138] sm:$0xff] %vm264_vm3, %v2512_v19  ;;  %305 = vst.msk [vmem:[#allocation2 + $0x140] sm:$0xff] %vm264_vm3, %v2512_v19  ;;  %v2394_v55 = vld [vmem:[%s2615_s11 + $0x190] ss:$8 sps:$4 sm:$0xff]   ;;  %v2397_v57 = vld [vmem:[%s2615_s11 + $0x1a4] ss:$8 sps:$4 sm:$0xff]  }
  0x2d   : > { %306 = vst.msk [vmem:[#allocation2 + $0x148] sm:$0xff] %vm264_vm3, %v2512_v19  ;;  %307 = vst.msk [vmem:[#allocation2 + $0x150] sm:$0xff] %vm264_vm3, %v2512_v19  ;;  %v2399_v58 = vld [vmem:[%s2615_s11 + $0xa0] ss:$8 sps:$4 sm:$0xff]   ;;  %v2401_v60 = vld [vmem:[%s2615_s11 + $0xb4] ss:$8 sps:$4 sm:$0xff]  }
  0x2e   : > { %938 = vmatpush1.bf16.msra.mxu0 %v2331_v9  ;;  %2261 = vmatpush1.bf16.msra.mxu1 %v2331_v9  ;;  %308 = vst.msk [vmem:[#allocation2 + $0x158] sm:$0xff] %vm264_vm3, %v2512_v19  ;;  %309 = vst.msk [vmem:[#allocation2 + $0x160] sm:$0xff] %vm264_vm3, %v2512_v19  ;;  %v2400_v59 = vld [vmem:[%s2615_s11 + $0x1a0] ss:$8 sps:$4 sm:$0xff]   ;;  %v2403_v61 = vld [vmem:[%s2615_s11 + $0x1b4] ss:$8 sps:$4 sm:$0xff]  }
  0x2f   : > { %939 = vmatprep.subr.bf16.mxu0 %v2510_v1  ;;  %2252 = vmatprep.subr.bf16.mxu1 %v2510_v1  ;;  %310 = vst.msk [vmem:[#allocation2 + $0x168] sm:$0xff] %vm264_vm3, %v2512_v19  ;;  %311 = vst.msk [vmem:[#allocation2 + $0x170] sm:$0xff] %vm264_vm3, %v2512_v19  ;;  %v2405_v62 = vld [vmem:[%s2615_s11 + $0xb0] ss:$8 sps:$4 sm:$0xff]   ;;  %v2407_v0 = vld [vmem:[%s2615_s11 + $0xc4] ss:$8 sps:$4 sm:$0xff]  }
  0x30   : > { %312 = vst.msk [vmem:[#allocation2 + $0x178] sm:$0xff] %vm264_vm3, %v2512_v19  ;;  %313 = vst.msk [vmem:[#allocation2 + $0x180] sm:$0xff] %vm264_vm3, %v2512_v19  ;;  %v2406_v63 = vld [vmem:[%s2615_s11 + $0x1b0] ss:$8 sps:$4 sm:$0xff]   ;;  %v2411_v2 = vld [vmem:[%s2615_s11 + $0xc0] ss:$8 sps:$4 sm:$0xff]  }
  0x31   : > { %314 = vst.msk [vmem:[#allocation2 + $0x188] sm:$0xff] %vm264_vm3, %v2512_v19  ;;  %315 = vst.msk [vmem:[#allocation2 + $0x190] sm:$0xff] %vm264_vm3, %v2512_v19  ;;  %v2412_v3 = vld [vmem:[%s2615_s11 + $0x1c0] ss:$8 sps:$4 sm:$0xff]   ;;  %v2413_v4 = vld [vmem:[%s2615_s11 + $0xd4] ss:$8 sps:$4 sm:$0xff]  }
  0x32   : > { %940 = vmatpush1.bf16.msra.mxu0 %v2332_v12  ;;  %2262 = vmatpush1.bf16.msra.mxu1 %v2332_v12  ;;  %316 = vst.msk [vmem:[#allocation2 + $0x198] sm:$0xff] %vm264_vm3, %v2512_v19  ;;  %317 = vst.msk [vmem:[#allocation2 + $0x1a0] sm:$0xff] %vm264_vm3, %v2512_v19  ;;  %v2415_v5 = vld [vmem:[%s2615_s11 + $0x1d4] ss:$8 sps:$4 sm:$0xff]   ;;  %v2417_v6 = vld [vmem:[%s2615_s11 + $0xd0] ss:$8 sps:$4 sm:$0xff]  }
  0x33   : > { %953 = vmatprep.subr.bf16.mxu0 %v2510_v1  ;;  %2253 = vmatprep.subr.bf16.mxu1 %v2510_v1  ;;  %318 = vst.msk [vmem:[#allocation2 + $0x1a8] sm:$0xff] %vm264_vm3, %v2512_v19  ;;  %319 = vst.msk [vmem:[#allocation2 + $0x1b0] sm:$0xff] %vm264_vm3, %v2512_v19  ;;  %v2418_v7 = vld [vmem:[%s2615_s11 + $0x1d0] ss:$8 sps:$4 sm:$0xff]   ;;  %v2419_v8 = vld [vmem:[%s2615_s11 + $0xe4] ss:$8 sps:$4 sm:$0xff]  }
  0x34   : > { %320 = vst.msk [vmem:[#allocation2 + $0x1b8] sm:$0xff] %vm264_vm3, %v2512_v19  ;;  %321 = vst.msk [vmem:[#allocation2 + $0x1c0] sm:$0xff] %vm264_vm3, %v2512_v19  ;;  %v2421_v9 = vld [vmem:[%s2615_s11 + $0x1e4] ss:$8 sps:$4 sm:$0xff]   ;;  %v2423_v10 = vld [vmem:[%s2615_s11 + $0xe0] ss:$8 sps:$4 sm:$0xff]  }
  0x35   : > { %322 = vst.msk [vmem:[#allocation2 + $0x1c8] sm:$0xff] %vm264_vm3, %v2512_v19  ;;  %323 = vst.msk [vmem:[#allocation2 + $0x1d0] sm:$0xff] %vm264_vm3, %v2512_v19  ;;  %v2424_v11 = vld [vmem:[%s2615_s11 + $0x1e0] ss:$8 sps:$4 sm:$0xff]   ;;  %v2425_v12 = vld [vmem:[%s2615_s11 + $0xf4] ss:$8 sps:$4 sm:$0xff]  }
  0x36   : > { %954 = vmatpush2.bf16.msra.mxu0 %v923_v15  ;;  %2263 = vmatpush2.bf16.msra.mxu1 %v923_v15  ;;  %324 = vst.msk [vmem:[#allocation2 + $0x1d8] sm:$0xff] %vm264_vm3, %v2512_v19  ;;  %325 = vst.msk [vmem:[#allocation2 + $0x1e0] sm:$0xff] %vm264_vm3, %v2512_v19  ;;  %v2427_v13 = vld [vmem:[%s2615_s11 + $0x1f4] ss:$8 sps:$4 sm:$0xff]   ;;  %v2429_v14 = vld [vmem:[%s2615_s11 + $0xf0] ss:$8 sps:$4 sm:$0xff]  }
  0x37   : > { %955 = vmatprep.subr.bf16.mxu0 %v2510_v1  ;;  %2254 = vmatprep.subr.bf16.mxu1 %v2510_v1  ;;  %326 = vst.msk [vmem:[#allocation2 + $0x1e8] sm:$0xff] %vm264_vm3, %v2512_v19  ;;  %327 = vst.msk [vmem:[#allocation2 + $0x1f0] sm:$0xff] %vm264_vm3, %v2512_v19  ;;  %v2409_v1 = vld [vmem:[%s2615_s11 + $0x1c4] ss:$8 sps:$4 sm:$0xff]   ;;  %v2430_v15 = vld [vmem:[%s2615_s11 + $0x1f0] ss:$8 sps:$4 sm:$0xff]  }
  0x38   : > { %328 = vst.msk [vmem:[#allocation2 + $0x1f8] sm:$0xff] %vm264_vm3, %v2512_v19  ;;  %s2901_s11 = scalar_lea.vmem [#allocation3], %s1999_s10 }
  0x39   : > { %s1881_s23 = sshll.u32 %s2901_s11, 4  ;;  %s3155_s23 = int_to_ptr.vmem [resolvable:$true] %s1881_s23 }
  0x3a   : > { %956 = vmatpush2.bf16.msra.mxu0 %v2649_v16  ;;  %2264 = vmatpush2.bf16.msra.mxu1 %v2649_v16  ;;  %v329_v16 = vld [vmem:[#allocation2] sm:$0xff]  ;;  %s2432_s29 = scalar_lea.vmem %s3155_s23, 4096  ;;  %p2439_p1 = scmp.lt.s32.totalorder %s3155_s23, %s2437_s4 }
  0x3b   : > { %p2433_p12 = scmp.ne.s32.totalorder %s3155_s23, %s2432_s29  ;;  %p2440_p2 = scmp.lt.s32.totalorder %s2438_s5, %s2432_s29 }
  0x3d   : > { %958 = vmatmul.mubr.bf16.vlgmr.msra.gmra.mxu0 %v2654_v17  ;;  %1086 = vmatmul.mubr.bf16.vlgmr.msra.gmra.mxu1 %v2657_v18  ;;  %v361_v17 = vld [vmem:[#allocation2 + $0x100] sm:$0xff]  ;;  %p2434_p13 = pnand %p2433_p12, %p2576_p4  ;;  %p2441_p3 = por %p2440_p2, %p2439_p1 }
  0x3e   : > { %2078 = vmatprep.mubr.msk.bf16.mxu0 %vm821_vm0, %v2341_v20  ;;  %2094 = vmatprep.mubr.msk.bf16.mxu1 %vm821_vm0, %v2343_v21 }
  0x3f   : > { %p2435_p0 = pneg %p2434_p13 }
  0x41   : > { %p2442_p5 = pnand %p2441_p3, %p2435_p0 }
  0x45   : > { %966 = vmatmul.mubr.bf16.gmra.mxu0 %v2345_v22  ;;  %1094 = vmatmul.mubr.bf16.gmra.mxu1 %v2346_v23 }
  0x46   : > { %2079 = vmatprep.mubr.msk.bf16.mxu0 %vm821_vm0, %v2347_v24  ;;  %2095 = vmatprep.mubr.msk.bf16.mxu1 %vm821_vm0, %v2349_v25  ;;  %v330_v24 = vld [vmem:[#allocation2 + $0x8] sm:$0xff] }
  0x47   : > { %v362_v25 = vld [vmem:[#allocation2 + $0x108] sm:$0xff] }
  0x4d   : > { %974 = vmatmul.mubr.bf16.gmra.mxu0 %v2351_v26  ;;  %1102 = vmatmul.mubr.bf16.gmra.mxu1 %v2352_v27 }
  0x4e   : > { %2080 = vmatprep.mubr.msk.bf16.mxu0 %vm821_vm0, %v2353_v28  ;;  %2096 = vmatprep.mubr.msk.bf16.mxu1 %vm821_vm0, %v2355_v29 }
  0x55   : > { %982 = vmatmul.mubr.bf16.gmra.mxu0 %v2357_v30  ;;  %1110 = vmatmul.mubr.bf16.gmra.mxu1 %v2358_v31 }
  0x56   : > { %2081 = vmatprep.mubr.msk.bf16.mxu0 %vm821_vm0, %v2359_v32  ;;  %2097 = vmatprep.mubr.msk.bf16.mxu1 %vm821_vm0, %v2361_v33  ;;  %v331_v32 = vld [vmem:[#allocation2 + $0x10] sm:$0xff] }
  0x57   : > { %v363_v33 = vld [vmem:[#allocation2 + $0x110] sm:$0xff] }
  0x5d   : > { %990 = vmatmul.mubr.bf16.gmra.mxu0 %v2363_v34  ;;  %1118 = vmatmul.mubr.bf16.gmra.mxu1 %v2364_v35  ;;  %v2889_v34 = vld [vmem:[%s3210_s2] ss:$0 sm:$0xff] }
  0x5e   : > { %2082 = vmatprep.mubr.msk.bf16.mxu0 %vm821_vm0, %v2365_v36  ;;  %2098 = vmatprep.mubr.msk.bf16.mxu1 %vm821_vm0, %v2367_v37 }
  0x65   : > { %998 = vmatmul.mubr.bf16.gmra.mxu0 %v2369_v38  ;;  %1126 = vmatmul.mubr.bf16.gmra.mxu1 %v2370_v39  ;;  %v332_v39 = vld [vmem:[#allocation2 + $0x18] sm:$0xff] }
  0x66   : > { %2083 = vmatprep.mubr.msk.bf16.mxu0 %vm821_vm0, %v2371_v40  ;;  %2099 = vmatprep.mubr.msk.bf16.mxu1 %vm821_vm0, %v2373_v41 }
  0x6d   : > { %1006 = vmatmul.mubr.bf16.gmra.mxu0 %v2375_v42  ;;  %1134 = vmatmul.mubr.bf16.gmra.mxu1 %v2376_v43 }
  0x6e   : > { %2084 = vmatprep.mubr.msk.bf16.mxu0 %vm821_vm0, %v2377_v44  ;;  %2100 = vmatprep.mubr.msk.bf16.mxu1 %vm821_vm0, %v2379_v45  ;;  %v364_v44 = vld [vmem:[#allocation2 + $0x118] sm:$0xff] }
  0x75   : > { %1014 = vmatmul.mubr.bf16.gmra.mxu0 %v2381_v46  ;;  %1142 = vmatmul.mubr.bf16.gmra.mxu1 %v2382_v47 }
  0x76   : > { %2085 = vmatprep.mubr.msk.bf16.mxu0 %vm821_vm0, %v2383_v48  ;;  %2101 = vmatprep.mubr.msk.bf16.mxu1 %vm821_vm0, %v2385_v49 }
  0x7d   : > { %1022 = vmatmul.mubr.bf16.gmra.mxu0 %v2387_v50  ;;  %1150 = vmatmul.mubr.bf16.gmra.mxu1 %v2388_v51 }
  0x7e   : > { %2086 = vmatprep.mubr.msk.bf16.mxu0 %vm821_vm0, %v2389_v52  ;;  %2102 = vmatprep.mubr.msk.bf16.mxu1 %vm821_vm0, %v2391_v53  ;;  %v333_v53 = vld [vmem:[#allocation2 + $0x20] sm:$0xff] }
  0x85   : > { %1030 = vmatmul.mubr.bf16.gmra.mxu0 %v2393_v54  ;;  %1158 = vmatmul.mubr.bf16.gmra.mxu1 %v2394_v55 }
  0x86   : > { %2087 = vmatprep.mubr.msk.bf16.mxu0 %vm821_vm0, %v2395_v56  ;;  %2103 = vmatprep.mubr.msk.bf16.mxu1 %vm821_vm0, %v2397_v57 }
  0x8d   : > { %1038 = vmatmul.mubr.bf16.gmra.mxu0 %v2399_v58  ;;  %1166 = vmatmul.mubr.bf16.gmra.mxu1 %v2400_v59  ;;  %v365_v58 = vld [vmem:[#allocation2 + $0x120] sm:$0xff] }
  0x8e   : > { %2088 = vmatprep.mubr.msk.bf16.mxu0 %vm821_vm0, %v2401_v60  ;;  %2104 = vmatprep.mubr.msk.bf16.mxu1 %vm821_vm0, %v2403_v61 }
  0x95   : > { %1046 = vmatmul.mubr.bf16.gmra.mxu0 %v2405_v62  ;;  %1174 = vmatmul.mubr.bf16.gmra.mxu1 %v2406_v63 }
  0x96   : > { %2089 = vmatprep.mubr.msk.bf16.mxu0 %vm821_vm0, %v2407_v0  ;;  %2105 = vmatprep.mubr.msk.bf16.mxu1 %vm821_vm0, %v2409_v1 }
  0x9d   : > { %1054 = vmatmul.mubr.bf16.gmra.mxu0 %v2411_v2  ;;  %1182 = vmatmul.mubr.bf16.gmra.mxu1 %v2412_v3 }
  0x9e   : > { %2090 = vmatprep.mubr.msk.bf16.mxu0 %vm821_vm0, %v2413_v4  ;;  %2106 = vmatprep.mubr.msk.bf16.mxu1 %vm821_vm0, %v2415_v5  ;;  %v334_v5 = vld [vmem:[#allocation2 + $0x28] sm:$0xff] }
  0xa5   : > { %1062 = vmatmul.mubr.bf16.gmra.mxu0 %v2417_v6  ;;  %1190 = vmatmul.mubr.bf16.gmra.mxu1 %v2418_v7 }
  0xa6   : > { %2091 = vmatprep.mubr.msk.bf16.mxu0 %vm821_vm0, %v2419_v8  ;;  %2107 = vmatprep.mubr.msk.bf16.mxu1 %vm821_vm0, %v2421_v9 }
  0xad   : > { %1070 = vmatmul.mubr.bf16.gmra.mxu0 %v2423_v10  ;;  %1198 = vmatmul.mubr.bf16.gmra.mxu1 %v2424_v11  ;;  %v366_v10 = vld [vmem:[#allocation2 + $0x128] sm:$0xff] }
  0xae   : > { %2092 = vmatprep.mubr.msk.bf16.mxu0 %vm821_vm0, %v2425_v12  ;;  %2108 = vmatprep.mubr.msk.bf16.mxu1 %vm821_vm0, %v2427_v13 }
  0xb5   : > { %1078 = vmatmul.mubr.bf16.gmra.mxu0 %v2429_v14  ;;  %1206 = vmatmul.mubr.bf16.gmra.mxu1 %v2430_v15 }
  0xfd   : > { %v959_v18 = vpop.f32.mrf.mxu0  ;;  %v1087_v19 = vpop.f32.mrf.mxu1 }
  0xfe   : > { %v1214_v20 = vadd.f32 %v959_v18, %v329_v16  ;;  %v1246_v21 = vadd.f32 %v1087_v19, %v361_v17 }
  0xff   : > { %v961_v22 = vpop.f32.mrf.mxu0  ;;  %v1089_v23 = vpop.f32.mrf.mxu1 }
 0x100   : > { %1279 = vst.msk [vmem:[#allocation2] sm:$0xff] %vm264_vm3, %v1214_v20  ;;  %1311 = vst.msk [vmem:[#allocation2 + $0x100] sm:$0xff] %vm264_vm3, %v1246_v21  ;;  %v335_v21 = vld [vmem:[#allocation2 + $0x30] sm:$0xff] }
 0x101   : > { %v962_v26 = vpop.f32.mrf.mxu0  ;;  %v1090_v27 = vpop.f32.mrf.mxu1 }
 0x102   : > { %v1215_v28 = vadd.f32 %v962_v26, %v330_v24  ;;  %v1247_v29 = vadd.f32 %v1090_v27, %v362_v25  ;;  %v367_v26 = vld [vmem:[#allocation2 + $0x130] sm:$0xff] }
 0x103   : > { %v964_v30 = vpop.f32.mrf.mxu0  ;;  %v1092_v31 = vpop.f32.mrf.mxu1 }
 0x104   : > { %1280 = vst.msk [vmem:[#allocation2 + $0x8] sm:$0xff] %vm264_vm3, %v1215_v28  ;;  %1312 = vst.msk [vmem:[#allocation2 + $0x108] sm:$0xff] %vm264_vm3, %v1247_v29 }
 0x105   : > { %v967_v35 = vpop.f32.mrf.mxu0  ;;  %v1095_v36 = vpop.f32.mrf.mxu1 }
 0x106   : > { %v1216_v37 = vadd.f32 %v967_v35, %v331_v32  ;;  %v1248_v38 = vadd.f32 %v1095_v36, %v363_v33 }
 0x107   : > { %v1346_v40 = vld [vmem:[#allocation2] sm:$0xff]  ;;  %v969_v42 = vpop.f32.mrf.mxu0  ;;  %v1097_v43 = vpop.f32.mrf.mxu1 }
 0x108   : > { %v1378_v41 = vld [vmem:[#allocation2 + $0x100] sm:$0xff]  ;;  %v1417_v45 = vadd.f32 %v2889_v34, %v1346_v40  ;;  %1281 = vst.msk [vmem:[#allocation2 + $0x10] sm:$0xff] %vm264_vm3, %v1216_v37  ;;  %1313 = vst.msk [vmem:[#allocation2 + $0x110] sm:$0xff] %vm264_vm3, %v1248_v38  ;;  %v336_v38 = vld [vmem:[#allocation2 + $0x38] sm:$0xff] }
 0x109   : > { %v1449_v46 = vadd.f32 %v2889_v34, %v1378_v41  ;;  %v970_v47 = vpop.f32.mrf.mxu0  ;;  %v1098_v48 = vpop.f32.mrf.mxu1  ;;  %v368_v43 = vld [vmem:[#allocation2 + $0x138] sm:$0xff] }
 0x10a   : > { %v1481_v49 = vmax.f32 %v1417_v45, 0.0  ;;  %v1217_v51 = vadd.f32 %v970_v47, %v332_v39  ;;  %v1249_v52 = vadd.f32 %v1098_v48, %v364_v44 }
 0x10b   : > { %v1513_v50 = vmax.f32 %v1449_v46, 0.0  ;;  %v1347_v54 = vld [vmem:[#allocation2 + $0x8] sm:$0xff]  ;;  %v972_v56 = vpop.f32.mrf.mxu0  ;;  %v1100_v57 = vpop.f32.mrf.mxu1 }
 0x10c   : > { %v1379_v55 = vld [vmem:[#allocation2 + $0x108] sm:$0xff]  ;;  %v2180_v59 = vpack.c.bf16 %v1481_v49, %v1481_v49  ;;  %v1418_v61 = vadd.f32 %v2889_v34, %v1347_v54  ;;  %1282 = vst.msk [vmem:[#allocation2 + $0x18] sm:$0xff] %vm264_vm3, %v1217_v51  ;;  %1314 = vst.msk [vmem:[#allocation2 + $0x118] sm:$0xff] %vm264_vm3, %v1249_v52  ;;  %v337_v54 = vld [vmem:[#allocation2 + $0x40] sm:$0xff] }
 0x10d   : > { %v2212_v60 = vpack.c.bf16 %v1513_v50, %v1513_v50  ;;  %v1450_v62 = vadd.f32 %v2889_v34, %v1379_v55  ;;  %v975_v63 = vpop.f32.mrf.mxu0  ;;  %v1103_v0 = vpop.f32.mrf.mxu1 }
 0x10e   : > { %1802 = vst.msk [vmem:[%s2901_s11] sm:$0xf] %vm1801_vm4, %v2180_v59  ;;  %v1482_v1 = vmax.f32 %v1418_v61, 0.0  ;;  %v1218_v3 = vadd.f32 %v975_v63, %v333_v53  ;;  %v1250_v4 = vadd.f32 %v1103_v0, %v365_v58  ;;  %v369_v59 = vld [vmem:[#allocation2 + $0x140] sm:$0xff] }
 0x10f   : > { %1834 = vst.msk [vmem:[%s2901_s11 + $0x80] sm:$0xf] %vm1801_vm4, %v2212_v60  ;;  %v1514_v2 = vmax.f32 %v1450_v62, 0.0  ;;  %v1348_v6 = vld [vmem:[#allocation2 + $0x10] sm:$0xff]  ;;  %v977_v8 = vpop.f32.mrf.mxu0  ;;  %v1105_v9 = vpop.f32.mrf.mxu1 }
 0x110   : > { %v1380_v7 = vld [vmem:[#allocation2 + $0x110] sm:$0xff]  ;;  %v2181_v11 = vpack.c.bf16 %v1482_v1, %v1482_v1  ;;  %v1419_v13 = vadd.f32 %v2889_v34, %v1348_v6  ;;  %1283 = vst.msk [vmem:[#allocation2 + $0x20] sm:$0xff] %vm264_vm3, %v1218_v3  ;;  %1315 = vst.msk [vmem:[#allocation2 + $0x120] sm:$0xff] %vm264_vm3, %v1250_v4  ;;  %v338_v6 = vld [vmem:[#allocation2 + $0x48] sm:$0xff] }
 0x111   : > { %v2213_v12 = vpack.c.bf16 %v1514_v2, %v1514_v2  ;;  %v1451_v14 = vadd.f32 %v2889_v34, %v1380_v7  ;;  %v978_v15 = vpop.f32.mrf.mxu0  ;;  %v1106_v16 = vpop.f32.mrf.mxu1 }
 0x112   : > { %1803 = vst.msk [vmem:[%s2901_s11 + $0x4] sm:$0xf] %vm1801_vm4, %v2181_v11  ;;  %v1483_v17 = vmax.f32 %v1419_v13, 0.0  ;;  %v1219_v19 = vadd.f32 %v978_v15, %v334_v5  ;;  %v1251_v20 = vadd.f32 %v1106_v16, %v366_v10  ;;  %v370_v11 = vld [vmem:[#allocation2 + $0x148] sm:$0xff] }
 0x113   : > { %1835 = vst.msk [vmem:[%s2901_s11 + $0x84] sm:$0xf] %vm1801_vm4, %v2213_v12  ;;  %v1515_v18 = vmax.f32 %v1451_v14, 0.0  ;;  %v1349_v22 = vld [vmem:[#allocation2 + $0x18] sm:$0xff]  ;;  %v980_v24 = vpop.f32.mrf.mxu0  ;;  %v1108_v25 = vpop.f32.mrf.mxu1 }
 0x114   : > { %v1381_v23 = vld [vmem:[#allocation2 + $0x118] sm:$0xff]  ;;  %v2182_v27 = vpack.c.bf16 %v1483_v17, %v1483_v17  ;;  %v1420_v29 = vadd.f32 %v2889_v34, %v1349_v22  ;;  %1284 = vst.msk [vmem:[#allocation2 + $0x28] sm:$0xff] %vm264_vm3, %v1219_v19  ;;  %1316 = vst.msk [vmem:[#allocation2 + $0x128] sm:$0xff] %vm264_vm3, %v1251_v20  ;;  %v339_v22 = vld [vmem:[#allocation2 + $0x50] sm:$0xff] }
 0x115   : > { %v2214_v28 = vpack.c.bf16 %v1515_v18, %v1515_v18  ;;  %v1452_v30 = vadd.f32 %v2889_v34, %v1381_v23  ;;  %v983_v31 = vpop.f32.mrf.mxu0  ;;  %v1111_v32 = vpop.f32.mrf.mxu1 }
 0x116   : > { %1804 = vst.msk [vmem:[%s2901_s11 + $0x8] sm:$0xf] %vm1801_vm4, %v2182_v27  ;;  %v1484_v33 = vmax.f32 %v1420_v29, 0.0  ;;  %v1220_v36 = vadd.f32 %v983_v31, %v335_v21  ;;  %v1252_v37 = vadd.f32 %v1111_v32, %v367_v26  ;;  %v371_v27 = vld [vmem:[#allocation2 + $0x150] sm:$0xff] }
 0x117   : > { %1836 = vst.msk [vmem:[%s2901_s11 + $0x88] sm:$0xf] %vm1801_vm4, %v2214_v28  ;;  %v1516_v35 = vmax.f32 %v1452_v30, 0.0  ;;  %v1350_v39 = vld [vmem:[#allocation2 + $0x20] sm:$0xff]  ;;  %v985_v41 = vpop.f32.mrf.mxu0  ;;  %v1113_v42 = vpop.f32.mrf.mxu1 }
 0x118   : > { %v1382_v40 = vld [vmem:[#allocation2 + $0x120] sm:$0xff]  ;;  %v2183_v44 = vpack.c.bf16 %v1484_v33, %v1484_v33  ;;  %v1421_v46 = vadd.f32 %v2889_v34, %v1350_v39  ;;  %1285 = vst.msk [vmem:[#allocation2 + $0x30] sm:$0xff] %vm264_vm3, %v1220_v36  ;;  %1317 = vst.msk [vmem:[#allocation2 + $0x130] sm:$0xff] %vm264_vm3, %v1252_v37  ;;  %v340_v39 = vld [vmem:[#allocation2 + $0x58] sm:$0xff] }
 0x119   : > { %v2215_v45 = vpack.c.bf16 %v1516_v35, %v1516_v35  ;;  %v1453_v47 = vadd.f32 %v2889_v34, %v1382_v40  ;;  %v986_v48 = vpop.f32.mrf.mxu0  ;;  %v1114_v49 = vpop.f32.mrf.mxu1 }
 0x11a   : > { %1805 = vst.msk [vmem:[%s2901_s11 + $0xc] sm:$0xf] %vm1801_vm4, %v2183_v44  ;;  %v1485_v50 = vmax.f32 %v1421_v46, 0.0  ;;  %v1221_v52 = vadd.f32 %v986_v48, %v336_v38  ;;  %v1253_v53 = vadd.f32 %v1114_v49, %v368_v43  ;;  %v372_v44 = vld [vmem:[#allocation2 + $0x158] sm:$0xff] }
 0x11b   : > { %1837 = vst.msk [vmem:[%s2901_s11 + $0x8c] sm:$0xf] %vm1801_vm4, %v2215_v45  ;;  %v1517_v51 = vmax.f32 %v1453_v47, 0.0  ;;  %v1351_v55 = vld [vmem:[#allocation2 + $0x28] sm:$0xff]  ;;  %v988_v57 = vpop.f32.mrf.mxu0  ;;  %v1116_v58 = vpop.f32.mrf.mxu1 }
 0x11c   : > { %v1383_v56 = vld [vmem:[#allocation2 + $0x128] sm:$0xff]  ;;  %v2184_v60 = vpack.c.bf16 %v1485_v50, %v1485_v50  ;;  %v1422_v62 = vadd.f32 %v2889_v34, %v1351_v55  ;;  %1286 = vst.msk [vmem:[#allocation2 + $0x38] sm:$0xff] %vm264_vm3, %v1221_v52  ;;  %1318 = vst.msk [vmem:[#allocation2 + $0x138] sm:$0xff] %vm264_vm3, %v1253_v53  ;;  %v341_v55 = vld [vmem:[#allocation2 + $0x60] sm:$0xff] }
 0x11d   : > { %v2216_v61 = vpack.c.bf16 %v1517_v51, %v1517_v51  ;;  %v1454_v63 = vadd.f32 %v2889_v34, %v1383_v56  ;;  %v991_v0 = vpop.f32.mrf.mxu0  ;;  %v1119_v1 = vpop.f32.mrf.mxu1 }
 0x11e   : > { %1806 = vst.msk [vmem:[%s2901_s11 + $0x10] sm:$0xf] %vm1801_vm4, %v2184_v60  ;;  %v1486_v2 = vmax.f32 %v1422_v62, 0.0  ;;  %v1222_v4 = vadd.f32 %v991_v0, %v337_v54  ;;  %v1254_v5 = vadd.f32 %v1119_v1, %v369_v59  ;;  %v373_v60 = vld [vmem:[#allocation2 + $0x160] sm:$0xff] }
 0x11f   : > { %1838 = vst.msk [vmem:[%s2901_s11 + $0x90] sm:$0xf] %vm1801_vm4, %v2216_v61  ;;  %v1518_v3 = vmax.f32 %v1454_v63, 0.0  ;;  %v1352_v7 = vld [vmem:[#allocation2 + $0x30] sm:$0xff]  ;;  %v993_v9 = vpop.f32.mrf.mxu0  ;;  %v1121_v10 = vpop.f32.mrf.mxu1 }
 0x120   : > { %v1384_v8 = vld [vmem:[#allocation2 + $0x130] sm:$0xff]  ;;  %v2185_v12 = vpack.c.bf16 %v1486_v2, %v1486_v2  ;;  %v1423_v14 = vadd.f32 %v2889_v34, %v1352_v7  ;;  %1287 = vst.msk [vmem:[#allocation2 + $0x40] sm:$0xff] %vm264_vm3, %v1222_v4  ;;  %1319 = vst.msk [vmem:[#allocation2 + $0x140] sm:$0xff] %vm264_vm3, %v1254_v5  ;;  %v342_v7 = vld [vmem:[#allocation2 + $0x68] sm:$0xff] }
 0x121   : > { %v2217_v13 = vpack.c.bf16 %v1518_v3, %v1518_v3  ;;  %v1455_v15 = vadd.f32 %v2889_v34, %v1384_v8  ;;  %v994_v16 = vpop.f32.mrf.mxu0  ;;  %v1122_v17 = vpop.f32.mrf.mxu1 }
 0x122   : > { %1807 = vst.msk [vmem:[%s2901_s11 + $0x14] sm:$0xf] %vm1801_vm4, %v2185_v12  ;;  %v1487_v18 = vmax.f32 %v1423_v14, 0.0  ;;  %v1223_v20 = vadd.f32 %v994_v16, %v338_v6  ;;  %v1255_v21 = vadd.f32 %v1122_v17, %v370_v11  ;;  %v374_v12 = vld [vmem:[#allocation2 + $0x168] sm:$0xff] }
 0x123   : > { %1839 = vst.msk [vmem:[%s2901_s11 + $0x94] sm:$0xf] %vm1801_vm4, %v2217_v13  ;;  %v1519_v19 = vmax.f32 %v1455_v15, 0.0  ;;  %v1353_v23 = vld [vmem:[#allocation2 + $0x38] sm:$0xff]  ;;  %v996_v25 = vpop.f32.mrf.mxu0  ;;  %v1124_v26 = vpop.f32.mrf.mxu1 }
 0x124   : > { %v1385_v24 = vld [vmem:[#allocation2 + $0x138] sm:$0xff]  ;;  %v2186_v28 = vpack.c.bf16 %v1487_v18, %v1487_v18  ;;  %v1424_v30 = vadd.f32 %v2889_v34, %v1353_v23  ;;  %1288 = vst.msk [vmem:[#allocation2 + $0x48] sm:$0xff] %vm264_vm3, %v1223_v20  ;;  %1320 = vst.msk [vmem:[#allocation2 + $0x148] sm:$0xff] %vm264_vm3, %v1255_v21  ;;  %v343_v23 = vld [vmem:[#allocation2 + $0x70] sm:$0xff] }
 0x125   : > { %v2218_v29 = vpack.c.bf16 %v1519_v19, %v1519_v19  ;;  %v1456_v31 = vadd.f32 %v2889_v34, %v1385_v24  ;;  %v999_v32 = vpop.f32.mrf.mxu0  ;;  %v1127_v33 = vpop.f32.mrf.mxu1 }
 0x126   : > { %1808 = vst.msk [vmem:[%s2901_s11 + $0x18] sm:$0xf] %vm1801_vm4, %v2186_v28  ;;  %v1488_v35 = vmax.f32 %v1424_v30, 0.0  ;;  %v1224_v37 = vadd.f32 %v999_v32, %v339_v22  ;;  %v1256_v38 = vadd.f32 %v1127_v33, %v371_v27  ;;  %v375_v28 = vld [vmem:[#allocation2 + $0x170] sm:$0xff] }
 0x127   : > { %1840 = vst.msk [vmem:[%s2901_s11 + $0x98] sm:$0xf] %vm1801_vm4, %v2218_v29  ;;  %v1520_v36 = vmax.f32 %v1456_v31, 0.0  ;;  %v1354_v40 = vld [vmem:[#allocation2 + $0x40] sm:$0xff]  ;;  %v1001_v42 = vpop.f32.mrf.mxu0  ;;  %v1129_v43 = vpop.f32.mrf.mxu1 }
 0x128   : > { %v1386_v41 = vld [vmem:[#allocation2 + $0x140] sm:$0xff]  ;;  %v2187_v45 = vpack.c.bf16 %v1488_v35, %v1488_v35  ;;  %v1425_v47 = vadd.f32 %v2889_v34, %v1354_v40  ;;  %1289 = vst.msk [vmem:[#allocation2 + $0x50] sm:$0xff] %vm264_vm3, %v1224_v37  ;;  %1321 = vst.msk [vmem:[#allocation2 + $0x150] sm:$0xff] %vm264_vm3, %v1256_v38  ;;  %v344_v40 = vld [vmem:[#allocation2 + $0x78] sm:$0xff] }
 0x129   : > { %v2219_v46 = vpack.c.bf16 %v1520_v36, %v1520_v36  ;;  %v1457_v48 = vadd.f32 %v2889_v34, %v1386_v41  ;;  %v1002_v49 = vpop.f32.mrf.mxu0  ;;  %v1130_v50 = vpop.f32.mrf.mxu1 }
 0x12a   : > { %1809 = vst.msk [vmem:[%s2901_s11 + $0x1c] sm:$0xf] %vm1801_vm4, %v2187_v45  ;;  %v1489_v51 = vmax.f32 %v1425_v47, 0.0  ;;  %v1225_v53 = vadd.f32 %v1002_v49, %v340_v39  ;;  %v1257_v54 = vadd.f32 %v1130_v50, %v372_v44  ;;  %v376_v45 = vld [vmem:[#allocation2 + $0x178] sm:$0xff] }
 0x12b   : > { %1841 = vst.msk [vmem:[%s2901_s11 + $0x9c] sm:$0xf] %vm1801_vm4, %v2219_v46  ;;  %v1521_v52 = vmax.f32 %v1457_v48, 0.0  ;;  %v1355_v56 = vld [vmem:[#allocation2 + $0x48] sm:$0xff]  ;;  %v1004_v58 = vpop.f32.mrf.mxu0  ;;  %v1132_v59 = vpop.f32.mrf.mxu1 }
 0x12c   : > { %v1387_v57 = vld [vmem:[#allocation2 + $0x148] sm:$0xff]  ;;  %v2188_v61 = vpack.c.bf16 %v1489_v51, %v1489_v51  ;;  %v1426_v63 = vadd.f32 %v2889_v34, %v1355_v56  ;;  %1290 = vst.msk [vmem:[#allocation2 + $0x58] sm:$0xff] %vm264_vm3, %v1225_v53  ;;  %1322 = vst.msk [vmem:[#allocation2 + $0x158] sm:$0xff] %vm264_vm3, %v1257_v54  ;;  %v345_v56 = vld [vmem:[#allocation2 + $0x80] sm:$0xff] }
 0x12d   : > { %v2220_v62 = vpack.c.bf16 %v1521_v52, %v1521_v52  ;;  %v1458_v0 = vadd.f32 %v2889_v34, %v1387_v57  ;;  %v1007_v1 = vpop.f32.mrf.mxu0  ;;  %v1135_v2 = vpop.f32.mrf.mxu1 }
 0x12e   : > { %1810 = vst.msk [vmem:[%s2901_s11 + $0x20] sm:$0xf] %vm1801_vm4, %v2188_v61  ;;  %v1490_v3 = vmax.f32 %v1426_v63, 0.0  ;;  %v1226_v5 = vadd.f32 %v1007_v1, %v341_v55  ;;  %v1258_v6 = vadd.f32 %v1135_v2, %v373_v60  ;;  %v377_v61 = vld [vmem:[#allocation2 + $0x180] sm:$0xff] }
 0x12f   : > { %1842 = vst.msk [vmem:[%s2901_s11 + $0xa0] sm:$0xf] %vm1801_vm4, %v2220_v62  ;;  %v1522_v4 = vmax.f32 %v1458_v0, 0.0  ;;  %v1356_v8 = vld [vmem:[#allocation2 + $0x50] sm:$0xff]  ;;  %v1009_v10 = vpop.f32.mrf.mxu0  ;;  %v1137_v11 = vpop.f32.mrf.mxu1 }
 0x130   : > { %v1388_v9 = vld [vmem:[#allocation2 + $0x150] sm:$0xff]  ;;  %v2189_v13 = vpack.c.bf16 %v1490_v3, %v1490_v3  ;;  %v1427_v15 = vadd.f32 %v2889_v34, %v1356_v8  ;;  %1291 = vst.msk [vmem:[#allocation2 + $0x60] sm:$0xff] %vm264_vm3, %v1226_v5  ;;  %1323 = vst.msk [vmem:[#allocation2 + $0x160] sm:$0xff] %vm264_vm3, %v1258_v6  ;;  %v346_v8 = vld [vmem:[#allocation2 + $0x88] sm:$0xff] }
 0x131   : > { %v2221_v14 = vpack.c.bf16 %v1522_v4, %v1522_v4  ;;  %v1459_v16 = vadd.f32 %v2889_v34, %v1388_v9  ;;  %v1010_v17 = vpop.f32.mrf.mxu0  ;;  %v1138_v18 = vpop.f32.mrf.mxu1 }
 0x132   : > { %1811 = vst.msk [vmem:[%s2901_s11 + $0x24] sm:$0xf] %vm1801_vm4, %v2189_v13  ;;  %v1491_v19 = vmax.f32 %v1427_v15, 0.0  ;;  %v1227_v21 = vadd.f32 %v1010_v17, %v342_v7  ;;  %v1259_v22 = vadd.f32 %v1138_v18, %v374_v12  ;;  %v378_v13 = vld [vmem:[#allocation2 + $0x188] sm:$0xff] }
 0x133   : > { %1843 = vst.msk [vmem:[%s2901_s11 + $0xa4] sm:$0xf] %vm1801_vm4, %v2221_v14  ;;  %v1523_v20 = vmax.f32 %v1459_v16, 0.0  ;;  %v1357_v24 = vld [vmem:[#allocation2 + $0x58] sm:$0xff]  ;;  %v1012_v26 = vpop.f32.mrf.mxu0  ;;  %v1140_v27 = vpop.f32.mrf.mxu1 }
 0x134   : > { %v1389_v25 = vld [vmem:[#allocation2 + $0x158] sm:$0xff]  ;;  %v2190_v29 = vpack.c.bf16 %v1491_v19, %v1491_v19  ;;  %v1428_v31 = vadd.f32 %v2889_v34, %v1357_v24  ;;  %1292 = vst.msk [vmem:[#allocation2 + $0x68] sm:$0xff] %vm264_vm3, %v1227_v21  ;;  %1324 = vst.msk [vmem:[#allocation2 + $0x168] sm:$0xff] %vm264_vm3, %v1259_v22  ;;  %v347_v24 = vld [vmem:[#allocation2 + $0x90] sm:$0xff] }
 0x135   : > { %v2222_v30 = vpack.c.bf16 %v1523_v20, %v1523_v20  ;;  %v1460_v32 = vadd.f32 %v2889_v34, %v1389_v25  ;;  %v1015_v33 = vpop.f32.mrf.mxu0  ;;  %v1143_v35 = vpop.f32.mrf.mxu1 }
 0x136   : > { %1812 = vst.msk [vmem:[%s2901_s11 + $0x28] sm:$0xf] %vm1801_vm4, %v2190_v29  ;;  %v1492_v36 = vmax.f32 %v1428_v31, 0.0  ;;  %v1228_v38 = vadd.f32 %v1015_v33, %v343_v23  ;;  %v1260_v39 = vadd.f32 %v1143_v35, %v375_v28  ;;  %v379_v29 = vld [vmem:[#allocation2 + $0x190] sm:$0xff] }
 0x137   : > { %1844 = vst.msk [vmem:[%s2901_s11 + $0xa8] sm:$0xf] %vm1801_vm4, %v2222_v30  ;;  %v1524_v37 = vmax.f32 %v1460_v32, 0.0  ;;  %v1358_v41 = vld [vmem:[#allocation2 + $0x60] sm:$0xff]  ;;  %v1017_v43 = vpop.f32.mrf.mxu0  ;;  %v1145_v44 = vpop.f32.mrf.mxu1 }
 0x138   : > { %v1390_v42 = vld [vmem:[#allocation2 + $0x160] sm:$0xff]  ;;  %v2191_v46 = vpack.c.bf16 %v1492_v36, %v1492_v36  ;;  %v1429_v48 = vadd.f32 %v2889_v34, %v1358_v41  ;;  %1293 = vst.msk [vmem:[#allocation2 + $0x70] sm:$0xff] %vm264_vm3, %v1228_v38  ;;  %1325 = vst.msk [vmem:[#allocation2 + $0x170] sm:$0xff] %vm264_vm3, %v1260_v39  ;;  %v348_v41 = vld [vmem:[#allocation2 + $0x98] sm:$0xff] }
 0x139   : > { %v2223_v47 = vpack.c.bf16 %v1524_v37, %v1524_v37  ;;  %v1461_v49 = vadd.f32 %v2889_v34, %v1390_v42  ;;  %v1018_v50 = vpop.f32.mrf.mxu0  ;;  %v1146_v51 = vpop.f32.mrf.mxu1 }
 0x13a   : > { %1813 = vst.msk [vmem:[%s2901_s11 + $0x2c] sm:$0xf] %vm1801_vm4, %v2191_v46  ;;  %v1493_v52 = vmax.f32 %v1429_v48, 0.0  ;;  %v1229_v54 = vadd.f32 %v1018_v50, %v344_v40  ;;  %v1261_v55 = vadd.f32 %v1146_v51, %v376_v45  ;;  %v380_v46 = vld [vmem:[#allocation2 + $0x198] sm:$0xff] }
 0x13b   : > { %1845 = vst.msk [vmem:[%s2901_s11 + $0xac] sm:$0xf] %vm1801_vm4, %v2223_v47  ;;  %v1525_v53 = vmax.f32 %v1461_v49, 0.0  ;;  %v1359_v57 = vld [vmem:[#allocation2 + $0x68] sm:$0xff]  ;;  %v1020_v59 = vpop.f32.mrf.mxu0  ;;  %v1148_v60 = vpop.f32.mrf.mxu1 }
 0x13c   : > { %v1391_v58 = vld [vmem:[#allocation2 + $0x168] sm:$0xff]  ;;  %v2192_v62 = vpack.c.bf16 %v1493_v52, %v1493_v52  ;;  %v1430_v0 = vadd.f32 %v2889_v34, %v1359_v57  ;;  %1294 = vst.msk [vmem:[#allocation2 + $0x78] sm:$0xff] %vm264_vm3, %v1229_v54  ;;  %1326 = vst.msk [vmem:[#allocation2 + $0x178] sm:$0xff] %vm264_vm3, %v1261_v55  ;;  %v349_v57 = vld [vmem:[#allocation2 + $0xa0] sm:$0xff] }
 0x13d   : > { %v2224_v63 = vpack.c.bf16 %v1525_v53, %v1525_v53  ;;  %v1462_v1 = vadd.f32 %v2889_v34, %v1391_v58  ;;  %v1023_v2 = vpop.f32.mrf.mxu0  ;;  %v1151_v3 = vpop.f32.mrf.mxu1 }
 0x13e   : > { %1814 = vst.msk [vmem:[%s2901_s11 + $0x30] sm:$0xf] %vm1801_vm4, %v2192_v62  ;;  %v1494_v4 = vmax.f32 %v1430_v0, 0.0  ;;  %v1230_v6 = vadd.f32 %v1023_v2, %v345_v56  ;;  %v1262_v7 = vadd.f32 %v1151_v3, %v377_v61  ;;  %v381_v62 = vld [vmem:[#allocation2 + $0x1a0] sm:$0xff] }
 0x13f   : > { %1846 = vst.msk [vmem:[%s2901_s11 + $0xb0] sm:$0xf] %vm1801_vm4, %v2224_v63  ;;  %v1526_v5 = vmax.f32 %v1462_v1, 0.0  ;;  %v1360_v9 = vld [vmem:[#allocation2 + $0x70] sm:$0xff]  ;;  %v1025_v11 = vpop.f32.mrf.mxu0  ;;  %v1153_v12 = vpop.f32.mrf.mxu1 }
 0x140   : > { %v1392_v10 = vld [vmem:[#allocation2 + $0x170] sm:$0xff]  ;;  %v2193_v14 = vpack.c.bf16 %v1494_v4, %v1494_v4  ;;  %v1431_v16 = vadd.f32 %v2889_v34, %v1360_v9  ;;  %1295 = vst.msk [vmem:[#allocation2 + $0x80] sm:$0xff] %vm264_vm3, %v1230_v6  ;;  %1327 = vst.msk [vmem:[#allocation2 + $0x180] sm:$0xff] %vm264_vm3, %v1262_v7  ;;  %v350_v9 = vld [vmem:[#allocation2 + $0xa8] sm:$0xff] }
 0x141   : > { %v2225_v15 = vpack.c.bf16 %v1526_v5, %v1526_v5  ;;  %v1463_v17 = vadd.f32 %v2889_v34, %v1392_v10  ;;  %v1026_v18 = vpop.f32.mrf.mxu0  ;;  %v1154_v19 = vpop.f32.mrf.mxu1 }
 0x142   : > { %1815 = vst.msk [vmem:[%s2901_s11 + $0x34] sm:$0xf] %vm1801_vm4, %v2193_v14  ;;  %v1495_v20 = vmax.f32 %v1431_v16, 0.0  ;;  %v1231_v22 = vadd.f32 %v1026_v18, %v346_v8  ;;  %v1263_v23 = vadd.f32 %v1154_v19, %v378_v13  ;;  %v382_v14 = vld [vmem:[#allocation2 + $0x1a8] sm:$0xff] }
 0x143   : > { %1847 = vst.msk [vmem:[%s2901_s11 + $0xb4] sm:$0xf] %vm1801_vm4, %v2225_v15  ;;  %v1527_v21 = vmax.f32 %v1463_v17, 0.0  ;;  %v1361_v25 = vld [vmem:[#allocation2 + $0x78] sm:$0xff]  ;;  %v1028_v27 = vpop.f32.mrf.mxu0  ;;  %v1156_v28 = vpop.f32.mrf.mxu1 }
 0x144   : > { %v1393_v26 = vld [vmem:[#allocation2 + $0x178] sm:$0xff]  ;;  %v2194_v30 = vpack.c.bf16 %v1495_v20, %v1495_v20  ;;  %v1432_v32 = vadd.f32 %v2889_v34, %v1361_v25  ;;  %1296 = vst.msk [vmem:[#allocation2 + $0x88] sm:$0xff] %vm264_vm3, %v1231_v22  ;;  %1328 = vst.msk [vmem:[#allocation2 + $0x188] sm:$0xff] %vm264_vm3, %v1263_v23  ;;  %v351_v25 = vld [vmem:[#allocation2 + $0xb0] sm:$0xff] }
 0x145   : > { %v2226_v31 = vpack.c.bf16 %v1527_v21, %v1527_v21  ;;  %v1464_v33 = vadd.f32 %v2889_v34, %v1393_v26  ;;  %v1031_v35 = vpop.f32.mrf.mxu0  ;;  %v1159_v36 = vpop.f32.mrf.mxu1 }
 0x146   : > { %1816 = vst.msk [vmem:[%s2901_s11 + $0x38] sm:$0xf] %vm1801_vm4, %v2194_v30  ;;  %v1496_v37 = vmax.f32 %v1432_v32, 0.0  ;;  %v1232_v39 = vadd.f32 %v1031_v35, %v347_v24  ;;  %v1264_v40 = vadd.f32 %v1159_v36, %v379_v29  ;;  %v383_v30 = vld [vmem:[#allocation2 + $0x1b0] sm:$0xff] }
 0x147   : > { %1848 = vst.msk [vmem:[%s2901_s11 + $0xb8] sm:$0xf] %vm1801_vm4, %v2226_v31  ;;  %v1528_v38 = vmax.f32 %v1464_v33, 0.0  ;;  %v1362_v42 = vld [vmem:[#allocation2 + $0x80] sm:$0xff]  ;;  %v1033_v44 = vpop.f32.mrf.mxu0  ;;  %v1161_v45 = vpop.f32.mrf.mxu1 }
 0x148   : > { %v1394_v43 = vld [vmem:[#allocation2 + $0x180] sm:$0xff]  ;;  %v2195_v47 = vpack.c.bf16 %v1496_v37, %v1496_v37  ;;  %v1433_v49 = vadd.f32 %v2889_v34, %v1362_v42  ;;  %1297 = vst.msk [vmem:[#allocation2 + $0x90] sm:$0xff] %vm264_vm3, %v1232_v39  ;;  %1329 = vst.msk [vmem:[#allocation2 + $0x190] sm:$0xff] %vm264_vm3, %v1264_v40  ;;  %v352_v42 = vld [vmem:[#allocation2 + $0xb8] sm:$0xff] }
 0x149   : > { %v2227_v48 = vpack.c.bf16 %v1528_v38, %v1528_v38  ;;  %v1465_v50 = vadd.f32 %v2889_v34, %v1394_v43  ;;  %v1034_v51 = vpop.f32.mrf.mxu0  ;;  %v1162_v52 = vpop.f32.mrf.mxu1 }
 0x14a   : > { %1817 = vst.msk [vmem:[%s2901_s11 + $0x3c] sm:$0xf] %vm1801_vm4, %v2195_v47  ;;  %v1497_v53 = vmax.f32 %v1433_v49, 0.0  ;;  %v1233_v55 = vadd.f32 %v1034_v51, %v348_v41  ;;  %v1265_v56 = vadd.f32 %v1162_v52, %v380_v46  ;;  %v384_v47 = vld [vmem:[#allocation2 + $0x1b8] sm:$0xff] }
 0x14b   : > { %1849 = vst.msk [vmem:[%s2901_s11 + $0xbc] sm:$0xf] %vm1801_vm4, %v2227_v48  ;;  %v1529_v54 = vmax.f32 %v1465_v50, 0.0  ;;  %v1363_v58 = vld [vmem:[#allocation2 + $0x88] sm:$0xff]  ;;  %v1036_v60 = vpop.f32.mrf.mxu0  ;;  %v1164_v61 = vpop.f32.mrf.mxu1 }
 0x14c   : > { %v1395_v59 = vld [vmem:[#allocation2 + $0x188] sm:$0xff]  ;;  %v2196_v63 = vpack.c.bf16 %v1497_v53, %v1497_v53  ;;  %v1434_v1 = vadd.f32 %v2889_v34, %v1363_v58  ;;  %1298 = vst.msk [vmem:[#allocation2 + $0x98] sm:$0xff] %vm264_vm3, %v1233_v55  ;;  %1330 = vst.msk [vmem:[#allocation2 + $0x198] sm:$0xff] %vm264_vm3, %v1265_v56  ;;  %v353_v58 = vld [vmem:[#allocation2 + $0xc0] sm:$0xff] }
 0x14d   : > { %v2228_v0 = vpack.c.bf16 %v1529_v54, %v1529_v54  ;;  %v1466_v2 = vadd.f32 %v2889_v34, %v1395_v59  ;;  %v1039_v3 = vpop.f32.mrf.mxu0  ;;  %v1167_v4 = vpop.f32.mrf.mxu1 }
 0x14e   : > { %1818 = vst.msk [vmem:[%s2901_s11 + $0x40] sm:$0xf] %vm1801_vm4, %v2196_v63  ;;  %v1498_v5 = vmax.f32 %v1434_v1, 0.0  ;;  %v1234_v7 = vadd.f32 %v1039_v3, %v349_v57  ;;  %v1266_v8 = vadd.f32 %v1167_v4, %v381_v62  ;;  %v385_v63 = vld [vmem:[#allocation2 + $0x1c0] sm:$0xff] }
 0x14f   : > { %1850 = vst.msk [vmem:[%s2901_s11 + $0xc0] sm:$0xf] %vm1801_vm4, %v2228_v0  ;;  %v1530_v6 = vmax.f32 %v1466_v2, 0.0  ;;  %v1364_v10 = vld [vmem:[#allocation2 + $0x90] sm:$0xff]  ;;  %v1041_v12 = vpop.f32.mrf.mxu0  ;;  %v1169_v13 = vpop.f32.mrf.mxu1 }
 0x150   : > { %v1396_v11 = vld [vmem:[#allocation2 + $0x190] sm:$0xff]  ;;  %v2197_v15 = vpack.c.bf16 %v1498_v5, %v1498_v5  ;;  %v1435_v17 = vadd.f32 %v2889_v34, %v1364_v10  ;;  %1299 = vst.msk [vmem:[#allocation2 + $0xa0] sm:$0xff] %vm264_vm3, %v1234_v7  ;;  %1331 = vst.msk [vmem:[#allocation2 + $0x1a0] sm:$0xff] %vm264_vm3, %v1266_v8  ;;  %v354_v10 = vld [vmem:[#allocation2 + $0xc8] sm:$0xff] }
 0x151   : > { %v2229_v16 = vpack.c.bf16 %v1530_v6, %v1530_v6  ;;  %v1467_v18 = vadd.f32 %v2889_v34, %v1396_v11  ;;  %v1042_v19 = vpop.f32.mrf.mxu0  ;;  %v1170_v20 = vpop.f32.mrf.mxu1 }
 0x152   : > { %1819 = vst.msk [vmem:[%s2901_s11 + $0x44] sm:$0xf] %vm1801_vm4, %v2197_v15  ;;  %v1499_v21 = vmax.f32 %v1435_v17, 0.0  ;;  %v1235_v23 = vadd.f32 %v1042_v19, %v350_v9  ;;  %v1267_v24 = vadd.f32 %v1170_v20, %v382_v14  ;;  %v386_v15 = vld [vmem:[#allocation2 + $0x1c8] sm:$0xff] }
 0x153   : > { %1851 = vst.msk [vmem:[%s2901_s11 + $0xc4] sm:$0xf] %vm1801_vm4, %v2229_v16  ;;  %v1531_v22 = vmax.f32 %v1467_v18, 0.0  ;;  %v1365_v26 = vld [vmem:[#allocation2 + $0x98] sm:$0xff]  ;;  %v1044_v28 = vpop.f32.mrf.mxu0  ;;  %v1172_v29 = vpop.f32.mrf.mxu1 }
 0x154   : > { %v1397_v27 = vld [vmem:[#allocation2 + $0x198] sm:$0xff]  ;;  %v2198_v31 = vpack.c.bf16 %v1499_v21, %v1499_v21  ;;  %v1436_v33 = vadd.f32 %v2889_v34, %v1365_v26  ;;  %1300 = vst.msk [vmem:[#allocation2 + $0xa8] sm:$0xff] %vm264_vm3, %v1235_v23  ;;  %1332 = vst.msk [vmem:[#allocation2 + $0x1a8] sm:$0xff] %vm264_vm3, %v1267_v24  ;;  %v355_v26 = vld [vmem:[#allocation2 + $0xd0] sm:$0xff] }
 0x155   : > { %v2230_v32 = vpack.c.bf16 %v1531_v22, %v1531_v22  ;;  %v1468_v35 = vadd.f32 %v2889_v34, %v1397_v27  ;;  %v1047_v36 = vpop.f32.mrf.mxu0  ;;  %v1175_v37 = vpop.f32.mrf.mxu1 }
 0x156   : > { %1820 = vst.msk [vmem:[%s2901_s11 + $0x48] sm:$0xf] %vm1801_vm4, %v2198_v31  ;;  %v1500_v38 = vmax.f32 %v1436_v33, 0.0  ;;  %v1236_v40 = vadd.f32 %v1047_v36, %v351_v25  ;;  %v1268_v41 = vadd.f32 %v1175_v37, %v383_v30  ;;  %v387_v31 = vld [vmem:[#allocation2 + $0x1d0] sm:$0xff] }
 0x157   : > { %1852 = vst.msk [vmem:[%s2901_s11 + $0xc8] sm:$0xf] %vm1801_vm4, %v2230_v32  ;;  %v1532_v39 = vmax.f32 %v1468_v35, 0.0  ;;  %v1366_v43 = vld [vmem:[#allocation2 + $0xa0] sm:$0xff]  ;;  %v1049_v45 = vpop.f32.mrf.mxu0  ;;  %v1177_v46 = vpop.f32.mrf.mxu1 }
 0x158   : > { %v1398_v44 = vld [vmem:[#allocation2 + $0x1a0] sm:$0xff]  ;;  %v2199_v48 = vpack.c.bf16 %v1500_v38, %v1500_v38  ;;  %v1437_v50 = vadd.f32 %v2889_v34, %v1366_v43  ;;  %1301 = vst.msk [vmem:[#allocation2 + $0xb0] sm:$0xff] %vm264_vm3, %v1236_v40  ;;  %1333 = vst.msk [vmem:[#allocation2 + $0x1b0] sm:$0xff] %vm264_vm3, %v1268_v41  ;;  %v356_v43 = vld [vmem:[#allocation2 + $0xd8] sm:$0xff] }
 0x159   : > { %v2231_v49 = vpack.c.bf16 %v1532_v39, %v1532_v39  ;;  %v1469_v51 = vadd.f32 %v2889_v34, %v1398_v44  ;;  %v1050_v52 = vpop.f32.mrf.mxu0  ;;  %v1178_v53 = vpop.f32.mrf.mxu1 }
 0x15a   : > { %1821 = vst.msk [vmem:[%s2901_s11 + $0x4c] sm:$0xf] %vm1801_vm4, %v2199_v48  ;;  %v1501_v54 = vmax.f32 %v1437_v50, 0.0  ;;  %v1237_v56 = vadd.f32 %v1050_v52, %v352_v42  ;;  %v1269_v57 = vadd.f32 %v1178_v53, %v384_v47  ;;  %v388_v48 = vld [vmem:[#allocation2 + $0x1d8] sm:$0xff] }
 0x15b   : > { %1853 = vst.msk [vmem:[%s2901_s11 + $0xcc] sm:$0xf] %vm1801_vm4, %v2231_v49  ;;  %v1533_v55 = vmax.f32 %v1469_v51, 0.0  ;;  %v1367_v59 = vld [vmem:[#allocation2 + $0xa8] sm:$0xff]  ;;  %v1052_v61 = vpop.f32.mrf.mxu0  ;;  %v1180_v62 = vpop.f32.mrf.mxu1 }
 0x15c   : > { %v1399_v60 = vld [vmem:[#allocation2 + $0x1a8] sm:$0xff]  ;;  %v2200_v0 = vpack.c.bf16 %v1501_v54, %v1501_v54  ;;  %v1438_v2 = vadd.f32 %v2889_v34, %v1367_v59  ;;  %1302 = vst.msk [vmem:[#allocation2 + $0xb8] sm:$0xff] %vm264_vm3, %v1237_v56  ;;  %1334 = vst.msk [vmem:[#allocation2 + $0x1b8] sm:$0xff] %vm264_vm3, %v1269_v57  ;;  %v357_v59 = vld [vmem:[#allocation2 + $0xe0] sm:$0xff] }
 0x15d   : > { %v2232_v1 = vpack.c.bf16 %v1533_v55, %v1533_v55  ;;  %v1470_v3 = vadd.f32 %v2889_v34, %v1399_v60  ;;  %v1055_v4 = vpop.f32.mrf.mxu0  ;;  %v1183_v5 = vpop.f32.mrf.mxu1 }
 0x15e   : > { %1822 = vst.msk [vmem:[%s2901_s11 + $0x50] sm:$0xf] %vm1801_vm4, %v2200_v0  ;;  %v1502_v6 = vmax.f32 %v1438_v2, 0.0  ;;  %v1238_v8 = vadd.f32 %v1055_v4, %v353_v58  ;;  %v1270_v9 = vadd.f32 %v1183_v5, %v385_v63  ;;  %v389_v63 = vld [vmem:[#allocation2 + $0x1e0] sm:$0xff] }
 0x15f   : > { %1854 = vst.msk [vmem:[%s2901_s11 + $0xd0] sm:$0xf] %vm1801_vm4, %v2232_v1  ;;  %v1534_v7 = vmax.f32 %v1470_v3, 0.0  ;;  %v1368_v11 = vld [vmem:[#allocation2 + $0xb0] sm:$0xff]  ;;  %v1057_v13 = vpop.f32.mrf.mxu0  ;;  %v1185_v14 = vpop.f32.mrf.mxu1  ;;  %v3094_v2 = vld [vmem:[%s3210_s2] ss:$0 sm:$0xff] }
 0x160   : > { %v1400_v12 = vld [vmem:[#allocation2 + $0x1b0] sm:$0xff]  ;;  %v2201_v16 = vpack.c.bf16 %v1502_v6, %v1502_v6  ;;  %v1439_v18 = vadd.f32 %v2889_v34, %v1368_v11  ;;  %1303 = vst.msk [vmem:[#allocation2 + $0xc0] sm:$0xff] %vm264_vm3, %v1238_v8  ;;  %1335 = vst.msk [vmem:[#allocation2 + $0x1c0] sm:$0xff] %vm264_vm3, %v1270_v9  ;;  %v358_v11 = vld [vmem:[#allocation2 + $0xe8] sm:$0xff] }
 0x161   : > { %v2233_v17 = vpack.c.bf16 %v1534_v7, %v1534_v7  ;;  %v1471_v19 = vadd.f32 %v2889_v34, %v1400_v12  ;;  %v1058_v20 = vpop.f32.mrf.mxu0  ;;  %v1186_v21 = vpop.f32.mrf.mxu1 }
 0x162   : > { %1823 = vst.msk [vmem:[%s2901_s11 + $0x54] sm:$0xf] %vm1801_vm4, %v2201_v16  ;;  %v1503_v22 = vmax.f32 %v1439_v18, 0.0  ;;  %v1239_v24 = vadd.f32 %v1058_v20, %v354_v10  ;;  %v1271_v25 = vadd.f32 %v1186_v21, %v386_v15  ;;  %v390_v16 = vld [vmem:[#allocation2 + $0x1e8] sm:$0xff] }
 0x163   : > { %1855 = vst.msk [vmem:[%s2901_s11 + $0xd4] sm:$0xf] %vm1801_vm4, %v2233_v17  ;;  %v1535_v23 = vmax.f32 %v1471_v19, 0.0  ;;  %v1369_v27 = vld [vmem:[#allocation2 + $0xb8] sm:$0xff]  ;;  %v1060_v29 = vpop.f32.mrf.mxu0  ;;  %v1188_v30 = vpop.f32.mrf.mxu1 }
 0x164   : > { %v1401_v28 = vld [vmem:[#allocation2 + $0x1b8] sm:$0xff]  ;;  %v2202_v32 = vpack.c.bf16 %v1503_v22, %v1503_v22  ;;  %v1440_v35 = vadd.f32 %v2889_v34, %v1369_v27  ;;  %1304 = vst.msk [vmem:[#allocation2 + $0xc8] sm:$0xff] %vm264_vm3, %v1239_v24  ;;  %1336 = vst.msk [vmem:[#allocation2 + $0x1c8] sm:$0xff] %vm264_vm3, %v1271_v25  ;;  %v359_v27 = vld [vmem:[#allocation2 + $0xf0] sm:$0xff] }
 0x165   : > { %v2234_v33 = vpack.c.bf16 %v1535_v23, %v1535_v23  ;;  %v1472_v36 = vadd.f32 %v2889_v34, %v1401_v28  ;;  %v1063_v37 = vpop.f32.mrf.mxu0  ;;  %v1191_v38 = vpop.f32.mrf.mxu1 }
 0x166   : > { %1824 = vst.msk [vmem:[%s2901_s11 + $0x58] sm:$0xf] %vm1801_vm4, %v2202_v32  ;;  %v1504_v39 = vmax.f32 %v1440_v35, 0.0  ;;  %v1240_v41 = vadd.f32 %v1063_v37, %v355_v26  ;;  %v1272_v42 = vadd.f32 %v1191_v38, %v387_v31  ;;  %v391_v32 = vld [vmem:[#allocation2 + $0x1f0] sm:$0xff] }
 0x167   : > { %1856 = vst.msk [vmem:[%s2901_s11 + $0xd8] sm:$0xf] %vm1801_vm4, %v2234_v33  ;;  %v1536_v40 = vmax.f32 %v1472_v36, 0.0  ;;  %v1370_v44 = vld [vmem:[#allocation2 + $0xc0] sm:$0xff]  ;;  %v1065_v46 = vpop.f32.mrf.mxu0  ;;  %v1193_v47 = vpop.f32.mrf.mxu1 }
 0x168   : > { %v1402_v45 = vld [vmem:[#allocation2 + $0x1c0] sm:$0xff]  ;;  %v2203_v49 = vpack.c.bf16 %v1504_v39, %v1504_v39  ;;  %v1441_v51 = vadd.f32 %v2889_v34, %v1370_v44  ;;  %1305 = vst.msk [vmem:[#allocation2 + $0xd0] sm:$0xff] %vm264_vm3, %v1240_v41  ;;  %1337 = vst.msk [vmem:[#allocation2 + $0x1d0] sm:$0xff] %vm264_vm3, %v1272_v42  ;;  %v360_v44 = vld [vmem:[#allocation2 + $0xf8] sm:$0xff] }
 0x169   : > { %v2235_v50 = vpack.c.bf16 %v1536_v40, %v1536_v40  ;;  %v1473_v52 = vadd.f32 %v2889_v34, %v1402_v45  ;;  %v1066_v53 = vpop.f32.mrf.mxu0  ;;  %v1194_v54 = vpop.f32.mrf.mxu1 }
 0x16a   : > { %1825 = vst.msk [vmem:[%s2901_s11 + $0x5c] sm:$0xf] %vm1801_vm4, %v2203_v49  ;;  %v1505_v55 = vmax.f32 %v1441_v51, 0.0  ;;  %v1241_v57 = vadd.f32 %v1066_v53, %v356_v43  ;;  %v1273_v58 = vadd.f32 %v1194_v54, %v388_v48  ;;  %v392_v49 = vld [vmem:[#allocation2 + $0x1f8] sm:$0xff] }
 0x16b   : > { %1857 = vst.msk [vmem:[%s2901_s11 + $0xdc] sm:$0xf] %vm1801_vm4, %v2235_v50  ;;  %v1537_v56 = vmax.f32 %v1473_v52, 0.0  ;;  %v1371_v60 = vld [vmem:[#allocation2 + $0xc8] sm:$0xff]  ;;  %v1068_v34 = vpop.f32.mrf.mxu0  ;;  %v1196_v62 = vpop.f32.mrf.mxu1 }
 0x16c   : > { %v1403_v61 = vld [vmem:[#allocation2 + $0x1c8] sm:$0xff]  ;;  %v2204_v0 = vpack.c.bf16 %v1505_v55, %v1505_v55  ;;  %v1442_v3 = vadd.f32 %v3094_v2, %v1371_v60  ;;  %1306 = vst.msk [vmem:[#allocation2 + $0xd8] sm:$0xff] %vm264_vm3, %v1241_v57  ;;  %1338 = vst.msk [vmem:[#allocation2 + $0x1d8] sm:$0xff] %vm264_vm3, %v1273_v58 }
 0x16d   : > { %v2236_v1 = vpack.c.bf16 %v1537_v56, %v1537_v56  ;;  %v1474_v4 = vadd.f32 %v3094_v2, %v1403_v61  ;;  %v1071_v5 = vpop.f32.mrf.mxu0  ;;  %v1199_v6 = vpop.f32.mrf.mxu1 }
 0x16e   : > { %1826 = vst.msk [vmem:[%s2901_s11 + $0x60] sm:$0xf] %vm1801_vm4, %v2204_v0  ;;  %v1506_v7 = vmax.f32 %v1442_v3, 0.0  ;;  %v1242_v9 = vadd.f32 %v1071_v5, %v357_v59  ;;  %v1274_v10 = vadd.f32 %v1199_v6, %v389_v63 }
 0x16f   : > { %1858 = vst.msk [vmem:[%s2901_s11 + $0xe0] sm:$0xf] %vm1801_vm4, %v2236_v1  ;;  %v1538_v8 = vmax.f32 %v1474_v4, 0.0  ;;  %v1372_v12 = vld [vmem:[#allocation2 + $0xd0] sm:$0xff]  ;;  %v1073_v14 = vpop.f32.mrf.mxu0  ;;  %v1201_v15 = vpop.f32.mrf.mxu1 }
 0x170   : > { %v1404_v13 = vld [vmem:[#allocation2 + $0x1d0] sm:$0xff]  ;;  %v2205_v17 = vpack.c.bf16 %v1506_v7, %v1506_v7  ;;  %v1443_v19 = vadd.f32 %v3094_v2, %v1372_v12  ;;  %1307 = vst.msk [vmem:[#allocation2 + $0xe0] sm:$0xff] %vm264_vm3, %v1242_v9  ;;  %1339 = vst.msk [vmem:[#allocation2 + $0x1e0] sm:$0xff] %vm264_vm3, %v1274_v10 }
 0x171   : > { %v2237_v18 = vpack.c.bf16 %v1538_v8, %v1538_v8  ;;  %v1475_v20 = vadd.f32 %v3094_v2, %v1404_v13  ;;  %v1074_v21 = vpop.f32.mrf.mxu0  ;;  %v1202_v22 = vpop.f32.mrf.mxu1 }
 0x172   : > { %1827 = vst.msk [vmem:[%s2901_s11 + $0x64] sm:$0xf] %vm1801_vm4, %v2205_v17  ;;  %v1507_v23 = vmax.f32 %v1443_v19, 0.0  ;;  %v1243_v25 = vadd.f32 %v1074_v21, %v358_v11  ;;  %v1275_v26 = vadd.f32 %v1202_v22, %v390_v16 }
 0x173   : > { %1859 = vst.msk [vmem:[%s2901_s11 + $0xe4] sm:$0xf] %vm1801_vm4, %v2237_v18  ;;  %v1539_v24 = vmax.f32 %v1475_v20, 0.0  ;;  %v1373_v28 = vld [vmem:[#allocation2 + $0xd8] sm:$0xff]  ;;  %v1076_v30 = vpop.f32.mrf.mxu0  ;;  %v1204_v31 = vpop.f32.mrf.mxu1 }
 0x174   : > { %v1405_v29 = vld [vmem:[#allocation2 + $0x1d8] sm:$0xff]  ;;  %v2206_v33 = vpack.c.bf16 %v1507_v23, %v1507_v23  ;;  %v1444_v36 = vadd.f32 %v3094_v2, %v1373_v28  ;;  %1308 = vst.msk [vmem:[#allocation2 + $0xe8] sm:$0xff] %vm264_vm3, %v1243_v25  ;;  %1340 = vst.msk [vmem:[#allocation2 + $0x1e8] sm:$0xff] %vm264_vm3, %v1275_v26 }
 0x175   : > { %v2238_v35 = vpack.c.bf16 %v1539_v24, %v1539_v24  ;;  %v1476_v37 = vadd.f32 %v3094_v2, %v1405_v29  ;;  %v1079_v38 = vpop.f32.mrf.mxu0  ;;  %v1207_v39 = vpop.f32.mrf.mxu1 }
 0x176   : > { %1828 = vst.msk [vmem:[%s2901_s11 + $0x68] sm:$0xf] %vm1801_vm4, %v2206_v33  ;;  %v1508_v40 = vmax.f32 %v1444_v36, 0.0  ;;  %v1244_v42 = vadd.f32 %v1079_v38, %v359_v27  ;;  %v1276_v43 = vadd.f32 %v1207_v39, %v391_v32 }
 0x177   : > { %1860 = vst.msk [vmem:[%s2901_s11 + $0xe8] sm:$0xf] %vm1801_vm4, %v2238_v35  ;;  %v1540_v41 = vmax.f32 %v1476_v37, 0.0  ;;  %v1374_v45 = vld [vmem:[#allocation2 + $0xe0] sm:$0xff]  ;;  %v1081_v47 = vpop.f32.mrf.mxu0  ;;  %v1209_v48 = vpop.f32.mrf.mxu1 }
 0x178   : > { %v1406_v46 = vld [vmem:[#allocation2 + $0x1e0] sm:$0xff]  ;;  %v2207_v50 = vpack.c.bf16 %v1508_v40, %v1508_v40  ;;  %v1445_v52 = vadd.f32 %v3094_v2, %v1374_v45  ;;  %1309 = vst.msk [vmem:[#allocation2 + $0xf0] sm:$0xff] %vm264_vm3, %v1244_v42  ;;  %1341 = vst.msk [vmem:[#allocation2 + $0x1f0] sm:$0xff] %vm264_vm3, %v1276_v43 }
 0x179   : > { %v2239_v51 = vpack.c.bf16 %v1540_v41, %v1540_v41  ;;  %v1477_v53 = vadd.f32 %v3094_v2, %v1406_v46  ;;  %v1082_v54 = vpop.f32.mrf.mxu0  ;;  %v1210_v55 = vpop.f32.mrf.mxu1 }
 0x17a   : > { %1829 = vst.msk [vmem:[%s2901_s11 + $0x6c] sm:$0xf] %vm1801_vm4, %v2207_v50  ;;  %v1509_v56 = vmax.f32 %v1445_v52, 0.0  ;;  %v1245_v58 = vadd.f32 %v1082_v54, %v360_v44  ;;  %v1277_v59 = vadd.f32 %v1210_v55, %v392_v49 }
 0x17b   : > { %1861 = vst.msk [vmem:[%s2901_s11 + $0xec] sm:$0xf] %vm1801_vm4, %v2239_v51  ;;  %v1541_v57 = vmax.f32 %v1477_v53, 0.0  ;;  %v1375_v60 = vld [vmem:[#allocation2 + $0xe8] sm:$0xff]  ;;  %v1084_v34 = vpop.f32.mrf.mxu0  ;;  %v1212_v62 = vpop.f32.mrf.mxu1 }
 0x17c   : > { %v1407_v61 = vld [vmem:[#allocation2 + $0x1e8] sm:$0xff]  ;;  %v2208_v63 = vpack.c.bf16 %v1509_v56, %v1509_v56  ;;  %v1446_v1 = vadd.f32 %v3094_v2, %v1375_v60  ;;  %1310 = vst.msk [vmem:[#allocation2 + $0xf8] sm:$0xff] %vm264_vm3, %v1245_v58  ;;  %1342 = vst.msk [vmem:[#allocation2 + $0x1f8] sm:$0xff] %vm264_vm3, %v1277_v59 }
 0x17d   : > { %v2240_v0 = vpack.c.bf16 %v1541_v57, %v1541_v57  ;;  %v1478_v3 = vadd.f32 %v3094_v2, %v1407_v61 }
 0x17e   : > { %1830 = vst.msk [vmem:[%s2901_s11 + $0x70] sm:$0xf] %vm1801_vm4, %v2208_v63  ;;  %v1510_v4 = vmax.f32 %v1446_v1, 0.0 }
 0x17f   : > { %1862 = vst.msk [vmem:[%s2901_s11 + $0xf0] sm:$0xf] %vm1801_vm4, %v2240_v0  ;;  %v1542_v5 = vmax.f32 %v1478_v3, 0.0  ;;  %v1376_v6 = vld [vmem:[#allocation2 + $0xf0] sm:$0xff] }
 0x180   : > { %v1408_v7 = vld [vmem:[#allocation2 + $0x1f0] sm:$0xff]  ;;  %v2209_v8 = vpack.c.bf16 %v1510_v4, %v1510_v4  ;;  %v1447_v10 = vadd.f32 %v3094_v2, %v1376_v6 }
 0x181   : > { %v2241_v9 = vpack.c.bf16 %v1542_v5, %v1542_v5  ;;  %v1479_v11 = vadd.f32 %v3094_v2, %v1408_v7 }
 0x182   : > { %1831 = vst.msk [vmem:[%s2901_s11 + $0x74] sm:$0xf] %vm1801_vm4, %v2209_v8  ;;  %v1511_v12 = vmax.f32 %v1447_v10, 0.0 }
 0x183   : > { %1863 = vst.msk [vmem:[%s2901_s11 + $0xf4] sm:$0xf] %vm1801_vm4, %v2241_v9  ;;  %v1543_v13 = vmax.f32 %v1479_v11, 0.0  ;;  %v1377_v14 = vld [vmem:[#allocation2 + $0xf8] sm:$0xff] }
 0x184   : > { %v1409_v15 = vld [vmem:[#allocation2 + $0x1f8] sm:$0xff]  ;;  %v2210_v16 = vpack.c.bf16 %v1511_v12, %v1511_v12  ;;  %v1448_v18 = vadd.f32 %v3094_v2, %v1377_v14 }
 0x185   : > { %v2242_v17 = vpack.c.bf16 %v1543_v13, %v1543_v13  ;;  %v1480_v19 = vadd.f32 %v3094_v2, %v1409_v15 }
 0x186   : > { %1832 = vst.msk [vmem:[%s2901_s11 + $0x78] sm:$0xf] %vm1801_vm4, %v2210_v16  ;;  %v1512_v20 = vmax.f32 %v1448_v18, 0.0 }
 0x187   : > { %1864 = vst.msk [vmem:[%s2901_s11 + $0xf8] sm:$0xf] %vm1801_vm4, %v2242_v17  ;;  %v1544_v21 = vmax.f32 %v1480_v19, 0.0 }
 0x188   : > { %v2211_v2 = vpack.c.bf16 %v1512_v20, %v1512_v20 }
 0x189   : > { %v2243_v22 = vpack.c.bf16 %v1544_v21, %v1544_v21 }
 0x18a   : > { %1833 = vst.msk [vmem:[%s2901_s11 + $0x7c] sm:$0xf] %vm1801_vm4, %v2211_v2 }
 0x18b   : > { %1865 = vst.msk [vmem:[%s2901_s11 + $0xfc] sm:$0xf] %vm1801_vm4, %v2243_v22 }
 0x18c   : > { %2445 = shalt.err (!%p2442_p5)
}
 0x18d   : > { %s2446_s6 = scalar_lea.hbm %s3153_s28, 4096  ;;  %s2450_s9 = scalar_lea.hbm %s3211_s3, 16384 }
 0x18e   : > { %p2447_p6 = scmp.ne.s32.totalorder %s3153_s28, %s2446_s6  ;;  %p2451_p10 = scmp.lt.s32.totalorder %s3153_s28, %s3211_s3 }
 0x18f   : > { %p2452_p11 = scmp.lt.s32.totalorder %s2450_s9, %s2446_s6 }
 0x190   : > { %p2448_p7 = pnand %p2447_p6, %p2576_p4 }
 0x191   : > { %p2453_p12 = por %p2452_p11, %p2451_p10 }
 0x192   : > { %p2449_p9 = pneg %p2448_p7 }
 0x194   : > { %p2454_p13 = pnand %p2453_p12, %p2449_p9 }
 0x196   : > { %2457 = shalt.err (!%p2454_p13)
}
 0x197   : > { %s2514_s18 = smov 64   ;;  %s2515_s19 = smov 4  }
 0x198   : > { %2265 = dma.vmem_to_hbm [thread:$0]  (%p2576_p4), %s3155_s23, 4096, %s3153_s28, %s3163_s15, %s2514_s18, %s2514_s18, %s2515_s19  }
 0x199 PF: > { %p2271_p0 = scmp.ge.s32.totalorder %s2508_s17, 2  ;;  %s1896_s21 = sand.u32 1, %s2488_s12  }
 0x19a   : > { %s1897_s26 = scalar_lea.sflag [#allocation4], %s1896_s21 }
 0x19b   : > { %p2268_p1 = pnand %p2271_p0, %p2583_p8 }
 0x19d   : > { %p2269_p2 = pneg %p2268_p1 }
 0x19f   : > { %2483 = dma.done.wait (%p2269_p2), %s1897_s26, 4096  }
 0x1a0   : > { %2485 = vsyncadd (%p2269_p2), %s1897_s26, 4294963200  ;;  %s16_s17 = sadd.s32 1, %s2508_s17   ;;  %s3214_s12 = smov %s2492_s13 }
 0x1a1   : > { %p13_p3 = scmp.ge.s32.totalorder %s16_s17, 6   ;;  %s3215_s13 = smov %s2496_s14 }
 0x1a2   : > { %s3216_s14 = smov %s2589_s25  ;;  %s3217_s15 = smov %s2504_s16 }
 0x1a3   : > { %s3218_s16 = smov %s3220_s20  ;;  %15 = sbr.rel (!%p13_p3) target bundleno = 4 (0x4), region = 81 }
 0x1a8   :  { %1902 = vsyncpa [#allocation4], 1 }
 0x1a9   :  { %1904 = vsyncpa [#allocation4 + $0x1], 1 }

</bundles_post_ra>
